<compile_context>
chip_gen: v6e
topology: v6e:2x2x1
jax: 0.10.0
libtpu: 0.0.40
codegen_flags: <defaults>
</compile_context>

<pallas_src>
import functools
import math

import jax
import jax.numpy as jnp
from jax.experimental import pallas as pl
from jax.experimental.pallas import tpu as pltpu

_SQRT1_2 = 1.0 / math.sqrt(2.0)
_BN_EPS = 1e-5


def _erf(v):
    # Abramowitz & Stegun 7.1.26 rational approximation, |error| < 1.5e-7.
    # Uses only exp / abs / where / polynomial ops (all guaranteed to lower).
    a1, a2, a3, a4, a5 = 0.254829592, -0.284496736, 1.421413741, -1.453152027, 1.061405429
    p = 0.3275911
    av = jnp.abs(v)
    t = 1.0 / (1.0 + p * av)
    poly = ((((a5 * t + a4) * t + a3) * t + a2) * t + a1) * t
    y = 1.0 - poly * jnp.exp(-av * av)
    return jnp.where(v >= 0.0, y, -y)


def _gelu_exact(h):
    # nn.GELU() default (erf-based), matching PyTorch.
    return 0.5 * h * (1.0 + _erf(h * _SQRT1_2))


def _shift_last(v, off):
    """Return array whose [..., l] element equals v[..., l + off], zero outside [0, L)."""
    if off == 0:
        return v
    pad = jnp.zeros(v.shape[:-1] + (abs(off),), v.dtype)
    if off > 0:
        return jnp.concatenate([v[..., off:], pad], axis=-1)
    return jnp.concatenate([pad, v[..., :off]], axis=-1)


def _hybrid_tcn_kernel(dilations, x_ref, dw_ref, pw_ref, gamma_ref, beta_ref,
                       w1_ref, b1_ref, w2_ref, b2_ref, o_ref):
    x = x_ref[...].astype(jnp.float32)          # (B, C, L)
    B, C, L = x.shape

    # --- multi-scale depthwise-separable convs, softmax-mix already folded into pw ---
    combined = jnp.zeros_like(x)
    for i, dil in enumerate(dilations):
        dwk = dw_ref[i]                          # (3, C) depthwise taps
        k0 = dwk[0:1, :][:, :, None]             # (1, C, 1)
        k1 = dwk[1:2, :][:, :, None]
        k2 = dwk[2:3, :][:, :, None]
        # depthwise conv, kernel=3, padding=dilation (cross-correlation, zero pad)
        y = (k0 * _shift_last(x, -dil)
             + k1 * x
             + k2 * _shift_last(x, +dil))        # (B, C, L)
        pw = pw_ref[i]                           # (C, C), pre-scaled by softmax(alpha)[i]
        o = jnp.stack(
            [jnp.dot(pw, y[b], preferred_element_type=jnp.float32) for b in range(B)],
            axis=0)                              # (B, C, L)
        combined = combined + o

    # --- BatchNorm1d (training-mode batch statistics, biased variance, eps=1e-5) ---
    n = float(B * L)
    s = jnp.sum(jnp.sum(combined, axis=2, keepdims=True), axis=0, keepdims=True)   # (1, C, 1)
    mean = s / n
    d2 = jnp.square(combined - mean)
    var = jnp.sum(jnp.sum(d2, axis=2, keepdims=True), axis=0, keepdims=True) / n
    inv = jax.lax.rsqrt(var + _BN_EPS)
    g = gamma_ref[...][None, :, :]               # (1, C, 1)
    bb = beta_ref[...][None, :, :]               # (1, C, 1)
    normed = (combined - mean) * inv * g + bb

    # --- ConvFFN: 1x1 conv -> GELU -> 1x1 conv, then residual ---
    w1 = w1_ref[...]                             # (H, C)
    b1 = b1_ref[...]                             # (H, 1)
    w2 = w2_ref[...]                             # (C, H)
    b2 = b2_ref[...]                             # (C, 1)
    outs = []
    for b in range(B):
        h = jnp.dot(w1, normed[b], preferred_element_type=jnp.float32) + b1   # (H, L)
        h = _gelu_exact(h)
        yb = jnp.dot(w2, h, preferred_element_type=jnp.float32) + b2          # (C, L)
        outs.append(yb + x[b])
    o_ref[...] = jnp.stack(outs, axis=0).astype(o_ref.dtype)


def hybrid_tcn_block(x, dw_w, pw_w, alpha, bn_gamma, bn_beta,
                     fc1_w, fc1_b, fc2_w, fc2_b, *, dilations):
    """Forward pass of HybridTCNBlock.

    x       : (B, C, L)
    dw_w    : (D, 3, C)   depthwise taps per dilation (tap, channel)
    pw_w    : (D, C, C)   pointwise (1x1) weights per dilation
    alpha   : (D,)        mixing logits
    bn_*    : (C,)        BatchNorm1d affine params
    fc1_w/b : (H, C)/(H,) ; fc2_w/b : (C, H)/(C,)
    """
    B, C, L = x.shape
    D = len(dilations)
    H = fc1_w.shape[0]
    assert dw_w.shape == (D, 3, C) and pw_w.shape == (D, C, C)
    assert max(dilations) < L

    # Parameter-only preprocessing (tiny): fold softmax(alpha) into pointwise
    # weights: w_d * (PW_d @ y) == (w_d * PW_d) @ y.
    mix = jax.nn.softmax(alpha.astype(jnp.float32))
    pw_scaled = pw_w.astype(jnp.float32) * mix[:, None, None]

    gamma2 = bn_gamma.reshape(C, 1).astype(jnp.float32)
    beta2 = bn_beta.reshape(C, 1).astype(jnp.float32)
    b1_2 = fc1_b.reshape(H, 1).astype(jnp.float32)
    b2_2 = fc2_b.reshape(C, 1).astype(jnp.float32)

    kernel = functools.partial(_hybrid_tcn_kernel, tuple(dilations))
    vmem = lambda: pl.BlockSpec(memory_space=pltpu.MemorySpace.VMEM)
    return pl.pallas_call(
        kernel,
        out_shape=jax.ShapeDtypeStruct((B, C, L), x.dtype),
        in_specs=[vmem() for _ in range(9)],
        out_specs=vmem(),
    )(x, dw_w.astype(jnp.float32), pw_scaled, gamma2, beta2,
      fc1_w.astype(jnp.float32), b1_2, fc2_w.astype(jnp.float32), b2_2)


def _reference(x, dw_w, pw_w, alpha, bn_gamma, bn_beta, fc1_w, fc1_b, fc2_w, fc2_b, dilations):
    """Pure-JAX reference mirroring the PyTorch module (training-mode BatchNorm)."""
    B, C, L = x.shape
    weights = jax.nn.softmax(alpha)
    combined = jnp.zeros_like(x)
    for i, dil in enumerate(dilations):
        xp = jnp.pad(x, ((0, 0), (0, 0), (dil, dil)))
        y = (dw_w[i, 0][None, :, None] * xp[..., 0:L]
             + dw_w[i, 1][None, :, None] * xp[..., dil:dil + L]
             + dw_w[i, 2][None, :, None] * xp[..., 2 * dil:2 * dil + L])
        o = jnp.einsum('oc,bcl->bol', pw_w[i], y)
        combined = combined + weights[i] * o
    mean = jnp.mean(combined, axis=(0, 2), keepdims=True)
    var = jnp.mean(jnp.square(combined - mean), axis=(0, 2), keepdims=True)
    normed = ((combined - mean) * jax.lax.rsqrt(var + _BN_EPS)
              * bn_gamma[None, :, None] + bn_beta[None, :, None])
    h = jnp.einsum('hc,bcl->bhl', fc1_w, normed) + fc1_b[None, :, None]
    h = jax.nn.gelu(h, approximate=False)
    y = jnp.einsum('ch,bhl->bcl', fc2_w, h) + fc2_b[None, :, None]
    return y + x


if __name__ == "__main__":
    B, C, L, H = 2, 16, 128, 32
    dilations = (1, 2, 4)
    D = len(dilations)

    key = jax.random.PRNGKey(0)
    ks = jax.random.split(key, 10)
    x = jax.random.normal(ks[0], (B, C, L), jnp.float32)
    dw_w = 0.2 * jax.random.normal(ks[1], (D, 3, C), jnp.float32)
    pw_w = jax.random.normal(ks[2], (D, C, C), jnp.float32) / math.sqrt(C)
    alpha = jax.random.normal(ks[3], (D,), jnp.float32)
    bn_gamma = 1.0 + 0.1 * jax.random.normal(ks[4], (C,), jnp.float32)
    bn_beta = 0.1 * jax.random.normal(ks[5], (C,), jnp.float32)
    fc1_w = jax.random.normal(ks[6], (H, C), jnp.float32) / math.sqrt(C)
    fc1_b = 0.1 * jax.random.normal(ks[7], (H,), jnp.float32)
    fc2_w = jax.random.normal(ks[8], (C, H), jnp.float32) / math.sqrt(H)
    fc2_b = 0.1 * jax.random.normal(ks[9], (C,), jnp.float32)

    fn = jax.jit(functools.partial(hybrid_tcn_block, dilations=dilations))
    out = jax.block_until_ready(
        fn(x, dw_w, pw_w, alpha, bn_gamma, bn_beta, fc1_w, fc1_b, fc2_w, fc2_b))

    ref = _reference(x, dw_w, pw_w, alpha, bn_gamma, bn_beta,
                     fc1_w, fc1_b, fc2_w, fc2_b, dilations)
    assert out.shape == (B, C, L)
    max_diff = float(jnp.max(jnp.abs(out - ref)))
    assert jnp.allclose(out, ref, atol=3e-2, rtol=3e-2), f"mismatch vs reference: {max_diff}"
    print("KERNEL_OK")
</pallas_src>

<mosaic_0001>
module attributes {stable_mosaic.version = 11 : i64} {
  func.func @_hybrid_tcn_kernel(%arg0: memref<2x16x128xf32, #tpu.memory_space<vmem>>, %arg1: memref<3x3x16xf32, #tpu.memory_space<vmem>>, %arg2: memref<3x16x16xf32, #tpu.memory_space<vmem>>, %arg3: memref<16x1xf32, #tpu.memory_space<vmem>>, %arg4: memref<16x1xf32, #tpu.memory_space<vmem>>, %arg5: memref<32x16xf32, #tpu.memory_space<vmem>>, %arg6: memref<32x1xf32, #tpu.memory_space<vmem>>, %arg7: memref<16x32xf32, #tpu.memory_space<vmem>>, %arg8: memref<16x1xf32, #tpu.memory_space<vmem>>, %arg9: memref<2x16x128xf32, #tpu.memory_space<vmem>>) attributes {dimension_semantics = [], scalar_prefetch = 0 : i64, scratch_operands = 0 : i64, tpu.core_type = #tpu.core_type<tc>} {
    %c0 = arith.constant 0 : index
    %c0_0 = arith.constant 0 : index
    %c0_1 = arith.constant 0 : index
    %0 = vector.load %arg0[%c0, %c0_0, %c0_1] : memref<2x16x128xf32, #tpu.memory_space<vmem>>, vector<2x16x128xf32>
    %cst = arith.constant 0.000000e+00 : f32
    %1 = vector.broadcast %cst : f32 to vector<2x16x128xf32>
    %c0_2 = arith.constant 0 : index
    %c0_3 = arith.constant 0 : index
    %c0_4 = arith.constant 0 : index
    %2 = vector.load %arg1[%c0_2, %c0_3, %c0_4] : memref<3x3x16xf32, #tpu.memory_space<vmem>>, vector<1x3x16xf32>
    %3 = vector.shape_cast %2 : vector<1x3x16xf32> to vector<3x16xf32>
    %4 = vector.extract_strided_slice %3 {offsets = [0, 0], sizes = [1, 16], strides = [1, 1]} : vector<3x16xf32> to vector<1x16xf32>
    %5 = vector.shape_cast %4 : vector<1x16xf32> to vector<1x16x1xf32>
    %6 = vector.extract_strided_slice %3 {offsets = [1, 0], sizes = [1, 16], strides = [1, 1]} : vector<3x16xf32> to vector<1x16xf32>
    %7 = vector.shape_cast %6 : vector<1x16xf32> to vector<1x16x1xf32>
    %8 = vector.extract_strided_slice %3 {offsets = [2, 0], sizes = [1, 16], strides = [1, 1]} : vector<3x16xf32> to vector<1x16xf32>
    %9 = vector.shape_cast %8 : vector<1x16xf32> to vector<1x16x1xf32>
    %cst_5 = arith.constant 0.000000e+00 : f32
    %10 = vector.broadcast %cst_5 : f32 to vector<2x16x1xf32>
    %11 = vector.extract_strided_slice %0 {offsets = [0, 0, 0], sizes = [2, 16, 127], strides = [1, 1, 1]} : vector<2x16x128xf32> to vector<2x16x127xf32>
    %12 = tpu.concatenate %10, %11 in 2 : vector<2x16x1xf32>, vector<2x16x127xf32> -> vector<2x16x128xf32>
    %13 = vector.broadcast %5 : vector<1x16x1xf32> to vector<2x16x128xf32>
    %14 = arith.mulf %13, %12 : vector<2x16x128xf32>
    %15 = vector.broadcast %7 : vector<1x16x1xf32> to vector<2x16x128xf32>
    %16 = arith.mulf %15, %0 : vector<2x16x128xf32>
    %17 = arith.addf %14, %16 : vector<2x16x128xf32>
    %cst_6 = arith.constant 0.000000e+00 : f32
    %18 = vector.broadcast %cst_6 : f32 to vector<2x16x1xf32>
    %19 = vector.extract_strided_slice %0 {offsets = [0, 0, 1], sizes = [2, 16, 127], strides = [1, 1, 1]} : vector<2x16x128xf32> to vector<2x16x127xf32>
    %20 = tpu.concatenate %19, %18 in 2 : vector<2x16x127xf32>, vector<2x16x1xf32> -> vector<2x16x128xf32>
    %21 = vector.broadcast %9 : vector<1x16x1xf32> to vector<2x16x128xf32>
    %22 = arith.mulf %21, %20 : vector<2x16x128xf32>
    %23 = arith.addf %17, %22 : vector<2x16x128xf32>
    %c0_7 = arith.constant 0 : index
    %c0_8 = arith.constant 0 : index
    %c0_9 = arith.constant 0 : index
    %24 = vector.load %arg2[%c0_7, %c0_8, %c0_9] : memref<3x16x16xf32, #tpu.memory_space<vmem>>, vector<1x16x16xf32>
    %25 = vector.shape_cast %24 : vector<1x16x16xf32> to vector<16x16xf32>
    %26 = vector.extract_strided_slice %23 {offsets = [0, 0, 0], sizes = [1, 16, 128], strides = [1, 1, 1]} : vector<2x16x128xf32> to vector<1x16x128xf32>
    %27 = vector.shape_cast %26 : vector<1x16x128xf32> to vector<16x128xf32>
    %cst_10 = arith.constant dense<0.000000e+00> : vector<16x128xf32>
    %28 = tpu.matmul %25, %27, %cst_10 {dimension_numbers = #tpu.dot_dimension_numbers<[1], [0], [0], [1], [0, 0, 1, 1], [], []>} : vector<16x16xf32>, vector<16x128xf32>, vector<16x128xf32> -> vector<16x128xf32>
    %29 = vector.extract_strided_slice %23 {offsets = [1, 0, 0], sizes = [1, 16, 128], strides = [1, 1, 1]} : vector<2x16x128xf32> to vector<1x16x128xf32>
    %30 = vector.shape_cast %29 : vector<1x16x128xf32> to vector<16x128xf32>
    %cst_11 = arith.constant dense<0.000000e+00> : vector<16x128xf32>
    %31 = tpu.matmul %25, %30, %cst_11 {dimension_numbers = #tpu.dot_dimension_numbers<[1], [0], [0], [1], [0, 0, 1, 1], [], []>} : vector<16x16xf32>, vector<16x128xf32>, vector<16x128xf32> -> vector<16x128xf32>
    %32 = vector.shape_cast %28 : vector<16x128xf32> to vector<1x16x128xf32>
    %33 = vector.shape_cast %31 : vector<16x128xf32> to vector<1x16x128xf32>
    %34 = tpu.concatenate %32, %33 in 0 : vector<1x16x128xf32>, vector<1x16x128xf32> -> vector<2x16x128xf32>
    %35 = arith.addf %1, %34 : vector<2x16x128xf32>
    %c1 = arith.constant 1 : index
    %c0_12 = arith.constant 0 : index
    %c0_13 = arith.constant 0 : index
    %36 = vector.load %arg1[%c1, %c0_12, %c0_13] : memref<3x3x16xf32, #tpu.memory_space<vmem>>, vector<1x3x16xf32>
    %37 = vector.shape_cast %36 : vector<1x3x16xf32> to vector<3x16xf32>
    %38 = vector.extract_strided_slice %37 {offsets = [0, 0], sizes = [1, 16], strides = [1, 1]} : vector<3x16xf32> to vector<1x16xf32>
    %39 = vector.shape_cast %38 : vector<1x16xf32> to vector<1x16x1xf32>
    %40 = vector.extract_strided_slice %37 {offsets = [1, 0], sizes = [1, 16], strides = [1, 1]} : vector<3x16xf32> to vector<1x16xf32>
    %41 = vector.shape_cast %40 : vector<1x16xf32> to vector<1x16x1xf32>
    %42 = vector.extract_strided_slice %37 {offsets = [2, 0], sizes = [1, 16], strides = [1, 1]} : vector<3x16xf32> to vector<1x16xf32>
    %43 = vector.shape_cast %42 : vector<1x16xf32> to vector<1x16x1xf32>
    %cst_14 = arith.constant 0.000000e+00 : f32
    %44 = vector.broadcast %cst_14 : f32 to vector<2x16x2xf32>
    %45 = vector.extract_strided_slice %0 {offsets = [0, 0, 0], sizes = [2, 16, 126], strides = [1, 1, 1]} : vector<2x16x128xf32> to vector<2x16x126xf32>
    %46 = tpu.concatenate %44, %45 in 2 : vector<2x16x2xf32>, vector<2x16x126xf32> -> vector<2x16x128xf32>
    %47 = vector.broadcast %39 : vector<1x16x1xf32> to vector<2x16x128xf32>
    %48 = arith.mulf %47, %46 : vector<2x16x128xf32>
    %49 = vector.broadcast %41 : vector<1x16x1xf32> to vector<2x16x128xf32>
    %50 = arith.mulf %49, %0 : vector<2x16x128xf32>
    %51 = arith.addf %48, %50 : vector<2x16x128xf32>
    %cst_15 = arith.constant 0.000000e+00 : f32
    %52 = vector.broadcast %cst_15 : f32 to vector<2x16x2xf32>
    %53 = vector.extract_strided_slice %0 {offsets = [0, 0, 2], sizes = [2, 16, 126], strides = [1, 1, 1]} : vector<2x16x128xf32> to vector<2x16x126xf32>
    %54 = tpu.concatenate %53, %52 in 2 : vector<2x16x126xf32>, vector<2x16x2xf32> -> vector<2x16x128xf32>
    %55 = vector.broadcast %43 : vector<1x16x1xf32> to vector<2x16x128xf32>
    %56 = arith.mulf %55, %54 : vector<2x16x128xf32>
    %57 = arith.addf %51, %56 : vector<2x16x128xf32>
    %c1_16 = arith.constant 1 : index
    %c0_17 = arith.constant 0 : index
    %c0_18 = arith.constant 0 : index
    %58 = vector.load %arg2[%c1_16, %c0_17, %c0_18] : memref<3x16x16xf32, #tpu.memory_space<vmem>>, vector<1x16x16xf32>
    %59 = vector.shape_cast %58 : vector<1x16x16xf32> to vector<16x16xf32>
    %60 = vector.extract_strided_slice %57 {offsets = [0, 0, 0], sizes = [1, 16, 128], strides = [1, 1, 1]} : vector<2x16x128xf32> to vector<1x16x128xf32>
    %61 = vector.shape_cast %60 : vector<1x16x128xf32> to vector<16x128xf32>
    %cst_19 = arith.constant dense<0.000000e+00> : vector<16x128xf32>
    %62 = tpu.matmul %59, %61, %cst_19 {dimension_numbers = #tpu.dot_dimension_numbers<[1], [0], [0], [1], [0, 0, 1, 1], [], []>} : vector<16x16xf32>, vector<16x128xf32>, vector<16x128xf32> -> vector<16x128xf32>
    %63 = vector.extract_strided_slice %57 {offsets = [1, 0, 0], sizes = [1, 16, 128], strides = [1, 1, 1]} : vector<2x16x128xf32> to vector<1x16x128xf32>
    %64 = vector.shape_cast %63 : vector<1x16x128xf32> to vector<16x128xf32>
    %cst_20 = arith.constant dense<0.000000e+00> : vector<16x128xf32>
    %65 = tpu.matmul %59, %64, %cst_20 {dimension_numbers = #tpu.dot_dimension_numbers<[1], [0], [0], [1], [0, 0, 1, 1], [], []>} : vector<16x16xf32>, vector<16x128xf32>, vector<16x128xf32> -> vector<16x128xf32>
    %66 = vector.shape_cast %62 : vector<16x128xf32> to vector<1x16x128xf32>
    %67 = vector.shape_cast %65 : vector<16x128xf32> to vector<1x16x128xf32>
    %68 = tpu.concatenate %66, %67 in 0 : vector<1x16x128xf32>, vector<1x16x128xf32> -> vector<2x16x128xf32>
    %69 = arith.addf %35, %68 : vector<2x16x128xf32>
    %c2 = arith.constant 2 : index
    %c0_21 = arith.constant 0 : index
    %c0_22 = arith.constant 0 : index
    %70 = vector.load %arg1[%c2, %c0_21, %c0_22] : memref<3x3x16xf32, #tpu.memory_space<vmem>>, vector<1x3x16xf32>
    %71 = vector.shape_cast %70 : vector<1x3x16xf32> to vector<3x16xf32>
    %72 = vector.extract_strided_slice %71 {offsets = [0, 0], sizes = [1, 16], strides = [1, 1]} : vector<3x16xf32> to vector<1x16xf32>
    %73 = vector.shape_cast %72 : vector<1x16xf32> to vector<1x16x1xf32>
    %74 = vector.extract_strided_slice %71 {offsets = [1, 0], sizes = [1, 16], strides = [1, 1]} : vector<3x16xf32> to vector<1x16xf32>
    %75 = vector.shape_cast %74 : vector<1x16xf32> to vector<1x16x1xf32>
    %76 = vector.extract_strided_slice %71 {offsets = [2, 0], sizes = [1, 16], strides = [1, 1]} : vector<3x16xf32> to vector<1x16xf32>
    %77 = vector.shape_cast %76 : vector<1x16xf32> to vector<1x16x1xf32>
    %cst_23 = arith.constant 0.000000e+00 : f32
    %78 = vector.broadcast %cst_23 : f32 to vector<2x16x4xf32>
    %79 = vector.extract_strided_slice %0 {offsets = [0, 0, 0], sizes = [2, 16, 124], strides = [1, 1, 1]} : vector<2x16x128xf32> to vector<2x16x124xf32>
    %80 = tpu.concatenate %78, %79 in 2 : vector<2x16x4xf32>, vector<2x16x124xf32> -> vector<2x16x128xf32>
    %81 = vector.broadcast %73 : vector<1x16x1xf32> to vector<2x16x128xf32>
    %82 = arith.mulf %81, %80 : vector<2x16x128xf32>
    %83 = vector.broadcast %75 : vector<1x16x1xf32> to vector<2x16x128xf32>
    %84 = arith.mulf %83, %0 : vector<2x16x128xf32>
    %85 = arith.addf %82, %84 : vector<2x16x128xf32>
    %cst_24 = arith.constant 0.000000e+00 : f32
    %86 = vector.broadcast %cst_24 : f32 to vector<2x16x4xf32>
    %87 = vector.extract_strided_slice %0 {offsets = [0, 0, 4], sizes = [2, 16, 124], strides = [1, 1, 1]} : vector<2x16x128xf32> to vector<2x16x124xf32>
    %88 = tpu.concatenate %87, %86 in 2 : vector<2x16x124xf32>, vector<2x16x4xf32> -> vector<2x16x128xf32>
    %89 = vector.broadcast %77 : vector<1x16x1xf32> to vector<2x16x128xf32>
    %90 = arith.mulf %89, %88 : vector<2x16x128xf32>
    %91 = arith.addf %85, %90 : vector<2x16x128xf32>
    %c2_25 = arith.constant 2 : index
    %c0_26 = arith.constant 0 : index
    %c0_27 = arith.constant 0 : index
    %92 = vector.load %arg2[%c2_25, %c0_26, %c0_27] : memref<3x16x16xf32, #tpu.memory_space<vmem>>, vector<1x16x16xf32>
    %93 = vector.shape_cast %92 : vector<1x16x16xf32> to vector<16x16xf32>
    %94 = vector.extract_strided_slice %91 {offsets = [0, 0, 0], sizes = [1, 16, 128], strides = [1, 1, 1]} : vector<2x16x128xf32> to vector<1x16x128xf32>
    %95 = vector.shape_cast %94 : vector<1x16x128xf32> to vector<16x128xf32>
    %cst_28 = arith.constant dense<0.000000e+00> : vector<16x128xf32>
    %96 = tpu.matmul %93, %95, %cst_28 {dimension_numbers = #tpu.dot_dimension_numbers<[1], [0], [0], [1], [0, 0, 1, 1], [], []>} : vector<16x16xf32>, vector<16x128xf32>, vector<16x128xf32> -> vector<16x128xf32>
    %97 = vector.extract_strided_slice %91 {offsets = [1, 0, 0], sizes = [1, 16, 128], strides = [1, 1, 1]} : vector<2x16x128xf32> to vector<1x16x128xf32>
    %98 = vector.shape_cast %97 : vector<1x16x128xf32> to vector<16x128xf32>
    %cst_29 = arith.constant dense<0.000000e+00> : vector<16x128xf32>
    %99 = tpu.matmul %93, %98, %cst_29 {dimension_numbers = #tpu.dot_dimension_numbers<[1], [0], [0], [1], [0, 0, 1, 1], [], []>} : vector<16x16xf32>, vector<16x128xf32>, vector<16x128xf32> -> vector<16x128xf32>
    %100 = vector.shape_cast %96 : vector<16x128xf32> to vector<1x16x128xf32>
    %101 = vector.shape_cast %99 : vector<16x128xf32> to vector<1x16x128xf32>
    %102 = tpu.concatenate %100, %101 in 0 : vector<1x16x128xf32>, vector<1x16x128xf32> -> vector<2x16x128xf32>
    %103 = arith.addf %69, %102 : vector<2x16x128xf32>
    %cst_30 = arith.constant dense<0.000000e+00> : vector<2x16xf32>
    %104 = vector.multi_reduction <add>, %103, %cst_30 [2] : vector<2x16x128xf32> to vector<2x16xf32>
    %105 = vector.shape_cast %104 : vector<2x16xf32> to vector<2x16x1xf32>
    %cst_31 = arith.constant dense<0.000000e+00> : vector<16x1xf32>
    %106 = vector.multi_reduction <add>, %105, %cst_31 [0] : vector<2x16x1xf32> to vector<16x1xf32>
    %107 = vector.shape_cast %106 : vector<16x1xf32> to vector<1x16x1xf32>
    %cst_32 = arith.constant 2.560000e+02 : f32
    %108 = vector.broadcast %cst_32 : f32 to vector<1x16x1xf32>
    %109 = arith.divf %107, %108 : vector<1x16x1xf32>
    %110 = vector.broadcast %109 : vector<1x16x1xf32> to vector<2x16x128xf32>
    %111 = arith.subf %103, %110 : vector<2x16x128xf32>
    %112 = arith.mulf %111, %111 : vector<2x16x128xf32>
    %cst_33 = arith.constant dense<0.000000e+00> : vector<2x16xf32>
    %113 = vector.multi_reduction <add>, %112, %cst_33 [2] : vector<2x16x128xf32> to vector<2x16xf32>
    %114 = vector.shape_cast %113 : vector<2x16xf32> to vector<2x16x1xf32>
    %cst_34 = arith.constant dense<0.000000e+00> : vector<16x1xf32>
    %115 = vector.multi_reduction <add>, %114, %cst_34 [0] : vector<2x16x1xf32> to vector<16x1xf32>
    %116 = vector.shape_cast %115 : vector<16x1xf32> to vector<1x16x1xf32>
    %cst_35 = arith.constant 2.560000e+02 : f32
    %117 = vector.broadcast %cst_35 : f32 to vector<1x16x1xf32>
    %118 = arith.divf %116, %117 : vector<1x16x1xf32>
    %cst_36 = arith.constant 9.99999974E-6 : f32
    %119 = vector.broadcast %cst_36 : f32 to vector<1x16x1xf32>
    %120 = arith.addf %118, %119 : vector<1x16x1xf32>
    %121 = math.rsqrt %120 : vector<1x16x1xf32>
    %c0_37 = arith.constant 0 : index
    %c0_38 = arith.constant 0 : index
    %122 = vector.load %arg3[%c0_37, %c0_38] : memref<16x1xf32, #tpu.memory_space<vmem>>, vector<16x1xf32>
    %123 = vector.shape_cast %122 : vector<16x1xf32> to vector<1x16x1xf32>
    %c0_39 = arith.constant 0 : index
    %c0_40 = arith.constant 0 : index
    %124 = vector.load %arg4[%c0_39, %c0_40] : memref<16x1xf32, #tpu.memory_space<vmem>>, vector<16x1xf32>
    %125 = vector.shape_cast %124 : vector<16x1xf32> to vector<1x16x1xf32>
    %126 = vector.broadcast %109 : vector<1x16x1xf32> to vector<2x16x128xf32>
    %127 = arith.subf %103, %126 : vector<2x16x128xf32>
    %128 = vector.broadcast %121 : vector<1x16x1xf32> to vector<2x16x128xf32>
    %129 = arith.mulf %127, %128 : vector<2x16x128xf32>
    %130 = vector.broadcast %123 : vector<1x16x1xf32> to vector<2x16x128xf32>
    %131 = arith.mulf %129, %130 : vector<2x16x128xf32>
    %132 = vector.broadcast %125 : vector<1x16x1xf32> to vector<2x16x128xf32>
    %133 = arith.addf %131, %132 : vector<2x16x128xf32>
    %c0_41 = arith.constant 0 : index
    %c0_42 = arith.constant 0 : index
    %134 = vector.load %arg5[%c0_41, %c0_42] : memref<32x16xf32, #tpu.memory_space<vmem>>, vector<32x16xf32>
    %c0_43 = arith.constant 0 : index
    %c0_44 = arith.constant 0 : index
    %135 = vector.load %arg6[%c0_43, %c0_44] : memref<32x1xf32, #tpu.memory_space<vmem>>, vector<32x1xf32>
    %c0_45 = arith.constant 0 : index
    %c0_46 = arith.constant 0 : index
    %136 = vector.load %arg7[%c0_45, %c0_46] : memref<16x32xf32, #tpu.memory_space<vmem>>, vector<16x32xf32>
    %c0_47 = arith.constant 0 : index
    %c0_48 = arith.constant 0 : index
    %137 = vector.load %arg8[%c0_47, %c0_48] : memref<16x1xf32, #tpu.memory_space<vmem>>, vector<16x1xf32>
    %138 = vector.extract_strided_slice %133 {offsets = [0, 0, 0], sizes = [1, 16, 128], strides = [1, 1, 1]} : vector<2x16x128xf32> to vector<1x16x128xf32>
    %139 = vector.shape_cast %138 : vector<1x16x128xf32> to vector<16x128xf32>
    %cst_49 = arith.constant dense<0.000000e+00> : vector<32x128xf32>
    %140 = tpu.matmul %134, %139, %cst_49 {dimension_numbers = #tpu.dot_dimension_numbers<[1], [0], [0], [1], [0, 0, 1, 1], [], []>} : vector<32x16xf32>, vector<16x128xf32>, vector<32x128xf32> -> vector<32x128xf32>
    %141 = vector.broadcast %135 : vector<32x1xf32> to vector<32x128xf32>
    %142 = arith.addf %140, %141 : vector<32x128xf32>
    %cst_50 = arith.constant 5.000000e-01 : f32
    %143 = vector.broadcast %cst_50 : f32 to vector<32x128xf32>
    %144 = arith.mulf %143, %142 : vector<32x128xf32>
    %cst_51 = arith.constant 0.707106769 : f32
    %145 = vector.broadcast %cst_51 : f32 to vector<32x128xf32>
    %146 = arith.mulf %142, %145 : vector<32x128xf32>
    %147 = math.absf %146 : vector<32x128xf32>
    %cst_52 = arith.constant 0.327591091 : f32
    %148 = vector.broadcast %cst_52 : f32 to vector<32x128xf32>
    %149 = arith.mulf %148, %147 : vector<32x128xf32>
    %cst_53 = arith.constant 1.000000e+00 : f32
    %150 = vector.broadcast %cst_53 : f32 to vector<32x128xf32>
    %151 = arith.addf %150, %149 : vector<32x128xf32>
    %cst_54 = arith.constant 1.000000e+00 : f32
    %152 = vector.broadcast %cst_54 : f32 to vector<32x128xf32>
    %153 = arith.divf %152, %151 : vector<32x128xf32>
    %cst_55 = arith.constant 1.06140542 : f32
    %154 = vector.broadcast %cst_55 : f32 to vector<32x128xf32>
    %155 = arith.mulf %154, %153 : vector<32x128xf32>
    %cst_56 = arith.constant -1.45315206 : f32
    %156 = vector.broadcast %cst_56 : f32 to vector<32x128xf32>
    %157 = arith.addf %155, %156 : vector<32x128xf32>
    %158 = arith.mulf %157, %153 : vector<32x128xf32>
    %cst_57 = arith.constant 1.42141378 : f32
    %159 = vector.broadcast %cst_57 : f32 to vector<32x128xf32>
    %160 = arith.addf %158, %159 : vector<32x128xf32>
    %161 = arith.mulf %160, %153 : vector<32x128xf32>
    %cst_58 = arith.constant -0.284496725 : f32
    %162 = vector.broadcast %cst_58 : f32 to vector<32x128xf32>
    %163 = arith.addf %161, %162 : vector<32x128xf32>
    %164 = arith.mulf %163, %153 : vector<32x128xf32>
    %cst_59 = arith.constant 0.254829586 : f32
    %165 = vector.broadcast %cst_59 : f32 to vector<32x128xf32>
    %166 = arith.addf %164, %165 : vector<32x128xf32>
    %167 = arith.mulf %166, %153 : vector<32x128xf32>
    %cst_60 = arith.constant 0.000000e+00 : f32
    %168 = vector.broadcast %cst_60 : f32 to vector<32x128xf32>
    %169 = arith.subf %168, %147 : vector<32x128xf32>
    %170 = arith.mulf %169, %147 : vector<32x128xf32>
    %171 = math.exp %170 : vector<32x128xf32>
    %172 = arith.mulf %167, %171 : vector<32x128xf32>
    %cst_61 = arith.constant 1.000000e+00 : f32
    %173 = vector.broadcast %cst_61 : f32 to vector<32x128xf32>
    %174 = arith.subf %173, %172 : vector<32x128xf32>
    %cst_62 = arith.constant 0.000000e+00 : f32
    %175 = vector.broadcast %cst_62 : f32 to vector<32x128xf32>
    %176 = arith.cmpf oge, %146, %175 : vector<32x128xf32>
    %cst_63 = arith.constant 0.000000e+00 : f32
    %177 = vector.broadcast %cst_63 : f32 to vector<32x128xf32>
    %178 = arith.subf %177, %174 : vector<32x128xf32>
    %179 = arith.select %176, %174, %178 : vector<32x128xi1>, vector<32x128xf32>
    %cst_64 = arith.constant 1.000000e+00 : f32
    %180 = vector.broadcast %cst_64 : f32 to vector<32x128xf32>
    %181 = arith.addf %180, %179 : vector<32x128xf32>
    %182 = arith.mulf %144, %181 : vector<32x128xf32>
    %cst_65 = arith.constant dense<0.000000e+00> : vector<16x128xf32>
    %183 = tpu.matmul %136, %182, %cst_65 {dimension_numbers = #tpu.dot_dimension_numbers<[1], [0], [0], [1], [0, 0, 1, 1], [], []>} : vector<16x32xf32>, vector<32x128xf32>, vector<16x128xf32> -> vector<16x128xf32>
    %184 = vector.broadcast %137 : vector<16x1xf32> to vector<16x128xf32>
    %185 = arith.addf %183, %184 : vector<16x128xf32>
    %186 = vector.extract_strided_slice %0 {offsets = [0, 0, 0], sizes = [1, 16, 128], strides = [1, 1, 1]} : vector<2x16x128xf32> to vector<1x16x128xf32>
    %187 = vector.shape_cast %186 : vector<1x16x128xf32> to vector<16x128xf32>
    %188 = arith.addf %185, %187 : vector<16x128xf32>
    %189 = vector.extract_strided_slice %133 {offsets = [1, 0, 0], sizes = [1, 16, 128], strides = [1, 1, 1]} : vector<2x16x128xf32> to vector<1x16x128xf32>
    %190 = vector.shape_cast %189 : vector<1x16x128xf32> to vector<16x128xf32>
    %cst_66 = arith.constant dense<0.000000e+00> : vector<32x128xf32>
    %191 = tpu.matmul %134, %190, %cst_66 {dimension_numbers = #tpu.dot_dimension_numbers<[1], [0], [0], [1], [0, 0, 1, 1], [], []>} : vector<32x16xf32>, vector<16x128xf32>, vector<32x128xf32> -> vector<32x128xf32>
    %192 = vector.broadcast %135 : vector<32x1xf32> to vector<32x128xf32>
    %193 = arith.addf %191, %192 : vector<32x128xf32>
    %cst_67 = arith.constant 5.000000e-01 : f32
    %194 = vector.broadcast %cst_67 : f32 to vector<32x128xf32>
    %195 = arith.mulf %194, %193 : vector<32x128xf32>
    %cst_68 = arith.constant 0.707106769 : f32
    %196 = vector.broadcast %cst_68 : f32 to vector<32x128xf32>
    %197 = arith.mulf %193, %196 : vector<32x128xf32>
    %198 = math.absf %197 : vector<32x128xf32>
    %cst_69 = arith.constant 0.327591091 : f32
    %199 = vector.broadcast %cst_69 : f32 to vector<32x128xf32>
    %200 = arith.mulf %199, %198 : vector<32x128xf32>
    %cst_70 = arith.constant 1.000000e+00 : f32
    %201 = vector.broadcast %cst_70 : f32 to vector<32x128xf32>
    %202 = arith.addf %201, %200 : vector<32x128xf32>
    %cst_71 = arith.constant 1.000000e+00 : f32
    %203 = vector.broadcast %cst_71 : f32 to vector<32x128xf32>
    %204 = arith.divf %203, %202 : vector<32x128xf32>
    %cst_72 = arith.constant 1.06140542 : f32
    %205 = vector.broadcast %cst_72 : f32 to vector<32x128xf32>
    %206 = arith.mulf %205, %204 : vector<32x128xf32>
    %cst_73 = arith.constant -1.45315206 : f32
    %207 = vector.broadcast %cst_73 : f32 to vector<32x128xf32>
    %208 = arith.addf %206, %207 : vector<32x128xf32>
    %209 = arith.mulf %208, %204 : vector<32x128xf32>
    %cst_74 = arith.constant 1.42141378 : f32
    %210 = vector.broadcast %cst_74 : f32 to vector<32x128xf32>
    %211 = arith.addf %209, %210 : vector<32x128xf32>
    %212 = arith.mulf %211, %204 : vector<32x128xf32>
    %cst_75 = arith.constant -0.284496725 : f32
    %213 = vector.broadcast %cst_75 : f32 to vector<32x128xf32>
    %214 = arith.addf %212, %213 : vector<32x128xf32>
    %215 = arith.mulf %214, %204 : vector<32x128xf32>
    %cst_76 = arith.constant 0.254829586 : f32
    %216 = vector.broadcast %cst_76 : f32 to vector<32x128xf32>
    %217 = arith.addf %215, %216 : vector<32x128xf32>
    %218 = arith.mulf %217, %204 : vector<32x128xf32>
    %cst_77 = arith.constant 0.000000e+00 : f32
    %219 = vector.broadcast %cst_77 : f32 to vector<32x128xf32>
    %220 = arith.subf %219, %198 : vector<32x128xf32>
    %221 = arith.mulf %220, %198 : vector<32x128xf32>
    %222 = math.exp %221 : vector<32x128xf32>
    %223 = arith.mulf %218, %222 : vector<32x128xf32>
    %cst_78 = arith.constant 1.000000e+00 : f32
    %224 = vector.broadcast %cst_78 : f32 to vector<32x128xf32>
    %225 = arith.subf %224, %223 : vector<32x128xf32>
    %cst_79 = arith.constant 0.000000e+00 : f32
    %226 = vector.broadcast %cst_79 : f32 to vector<32x128xf32>
    %227 = arith.cmpf oge, %197, %226 : vector<32x128xf32>
    %cst_80 = arith.constant 0.000000e+00 : f32
    %228 = vector.broadcast %cst_80 : f32 to vector<32x128xf32>
    %229 = arith.subf %228, %225 : vector<32x128xf32>
    %230 = arith.select %227, %225, %229 : vector<32x128xi1>, vector<32x128xf32>
    %cst_81 = arith.constant 1.000000e+00 : f32
    %231 = vector.broadcast %cst_81 : f32 to vector<32x128xf32>
    %232 = arith.addf %231, %230 : vector<32x128xf32>
    %233 = arith.mulf %195, %232 : vector<32x128xf32>
    %cst_82 = arith.constant dense<0.000000e+00> : vector<16x128xf32>
    %234 = tpu.matmul %136, %233, %cst_82 {dimension_numbers = #tpu.dot_dimension_numbers<[1], [0], [0], [1], [0, 0, 1, 1], [], []>} : vector<16x32xf32>, vector<32x128xf32>, vector<16x128xf32> -> vector<16x128xf32>
    %235 = vector.broadcast %137 : vector<16x1xf32> to vector<16x128xf32>
    %236 = arith.addf %234, %235 : vector<16x128xf32>
    %237 = vector.extract_strided_slice %0 {offsets = [1, 0, 0], sizes = [1, 16, 128], strides = [1, 1, 1]} : vector<2x16x128xf32> to vector<1x16x128xf32>
    %238 = vector.shape_cast %237 : vector<1x16x128xf32> to vector<16x128xf32>
    %239 = arith.addf %236, %238 : vector<16x128xf32>
    %240 = vector.shape_cast %188 : vector<16x128xf32> to vector<1x16x128xf32>
    %241 = vector.shape_cast %239 : vector<16x128xf32> to vector<1x16x128xf32>
    %242 = tpu.concatenate %240, %241 in 0 : vector<1x16x128xf32>, vector<1x16x128xf32> -> vector<2x16x128xf32>
    %c0_83 = arith.constant 0 : index
    %c0_84 = arith.constant 0 : index
    %c0_85 = arith.constant 0 : index
    %243 = vector.load %arg9[%c0_83, %c0_84, %c0_85] : memref<2x16x128xf32, #tpu.memory_space<vmem>>, vector<2x16x128xf32>
    tpu.vector_store %arg9[%c0_83, %c0_84, %c0_85], %242 {strides = array<i32>} : memref<2x16x128xf32, #tpu.memory_space<vmem>>, vector<2x16x128xf32>,
    return
  }
}

</mosaic_0001>

<bundles_post_ra>
// kernel: hybrid_tcn_block.1
= control target key start
LH: loop header
LB: loop body
LE: loop exit
PB: predicated region body
PF: predicated region fallthrough
CT: control target
= control target key end

     0   :  { %v38_v2 = vlaneseq  ;;  %s1726_s13 = smov 1   ;;  %s2108_s0 = inlined_call_operand.vmem [shape: f32[2,16,128], index: 0, kind: input, shape index: {}]   ;;  %s2109_s1 = inlined_call_operand.vmem [shape: f32[3,3,16], index: 1, kind: input, shape index: {}]   ;;  %s2110_s2 = inlined_call_operand.vmem [shape: f32[3,16,16], index: 2, kind: input, shape index: {}]   ;;  %s2111_s3 = inlined_call_operand.vmem [shape: f32[16,1], index: 3, kind: input, shape index: {}]   ;;  %s2112_s4 = inlined_call_operand.vmem [shape: f32[16,1], index: 4, kind: input, shape index: {}]   ;;  %s2113_s5 = inlined_call_operand.vmem [shape: f32[32,16], index: 5, kind: input, shape index: {}]   ;;  %s2114_s6 = inlined_call_operand.vmem [shape: f32[32,1], index: 6, kind: input, shape index: {}]   ;;  %s2115_s7 = inlined_call_operand.vmem [shape: f32[16,32], index: 7, kind: input, shape index: {}]   ;;  %s2116_s8 = inlined_call_operand.vmem [shape: f32[16,1], index: 8, kind: input, shape index: {}]   ;;  %s2117_s9 = inlined_call_operand.hbm [shape: f32[2,16,128], index: 9, kind: output, shape index: {}]  }
   0x1   :  { %v1789_v0 = vld [vmem:[%s2108_s0 + $0x8] sm:$0xff]  ;;  %v1794_v1 = vld [vmem:[%s2108_s0 + $0x10] sm:$0xff]  ;;  %v1801_v3 = vld [vmem:[%s2108_s0 + $0x18] sm:$0xff] }
   0x2   :  { %77 = vrot.lane.b32.xlu0 %v1789_v0, %s1726_s13  ;;  %79 = vrot.lane.b32.xlu1 %v1794_v1, %s1726_s13  ;;  %v39_v4 = vshrl.u32 %v38_v2, 7  ;;  %v37_v5 = vld [vmem:[%s2109_s1] sm:$0x7] }
   0x3   :  { %14 = vsyncpa [#allocation3], 0  ;;  %v1810_v9 = vld [vmem:[%s2108_s0] sm:$0xff]  ;;  %s1727_s20 = smov 127   ;;  %s1728_s23 = smov 2   ;;  %vm131_vm0 = vcmask 130048  }
   0x4   :  { %v40_v6 = vsub.s32 0, %v39_v4  ;;  %v51_v7 = vsub.s32 1, %v39_v4  ;;  %v62_v11 = vsub.s32 2, %v39_v4  ;;  %v1494_v13 = vld [vmem:[%s2109_s1 + $0x4] sm:$0x7]  ;;  %s1729_s26 = smov 126  }
   0x5   :  { %v129_v16 = vld [vmem:[%s2110_s2] sm:$0xff]  ;;  %v1501_v18 = vld [vmem:[%s2109_s1 + $0x8] sm:$0x7]  ;;  %s1730_s29 = smov 4   ;;  %s1731_s30 = smov 124   ;;  %vm87_vm1 = vcmask 7168  }
   0x6   :  { %81 = vrot.lane.b32.xlu0 %v1801_v3, %s1726_s13  ;;  %v41_v8 = vrot.slane %v37_v5, %v40_v6  ;;  %v52_v10 = vrot.slane %v37_v5, %v51_v7  ;;  %v63_v12 = vrot.slane %v37_v5, %v62_v11  ;;  %v297_v14 = vrot.slane %v1494_v13, %v40_v6  ;;  %s1733_s25 = smov [#allocation2]  }
   0x7   :  { %v308_v15 = vrot.slane %v1494_v13, %v51_v7  ;;  %1572 = vmatprep.mubr.msk.f32.mxu0 %vm131_vm0, %v129_v16  ;;  %1579 = vmatprep.mubr.msk.f32.mxu1 %vm131_vm0, %v129_v16  ;;  %v319_v17 = vrot.slane %v1494_v13, %v62_v11  ;;  %v549_v19 = vrot.slane %v1501_v18, %v40_v6  ;;  %vm116_vm2 = vcmask 1039360  }
   0x8   :  { %47 = vbcast.lane.b32.xlu1 %v41_v8, 264  ;;  %v560_v20 = vrot.slane %v1501_v18, %v51_v7  ;;  %v571_v21 = vrot.slane %v1501_v18, %v62_v11  ;;  %v130_v7 = vld [vmem:[%s2110_s2 + $0x8] sm:$0xff]  ;;  %vm339_vm3 = vcmask 15360   ;;  %vm368_vm4 = vcmask 1031168  }
   0x9   :  { %vm591_vm5 = vcmask 31744   ;;  %vm620_vm6 = vcmask 1014784   ;;  %vm1116_vm7 = vcmask 261120  }
   0xa   :  { %75 = vrot.lane.b32.xlu0 %v1810_v9, %s1726_s13 }
   0xc   :  { %58 = vbcast.lane.b32.xlu1 %v52_v10, 264 }
   0xe   :  { %106 = vrot.lane.b32.xlu0 %v1789_v0, %s1727_s20 }
  0x10   :  { %110 = vrot.lane.b32.xlu1 %v1801_v3, %s1727_s20 }
  0x12   :  { %43 = vbcast.lane.b32.xlu0 %v41_v8, 256 }
  0x14   :  { %54 = vbcast.lane.b32.xlu1 %v52_v10, 256  ;;  %v1495_v10 = vld [vmem:[%s2110_s2 + $0x10] sm:$0xff] }
  0x16   :  { %69 = vbcast.lane.b32.xlu0 %v63_v12, 264 }
  0x18   :  { %104 = vrot.lane.b32.xlu1 %v1810_v9, %s1727_s20 }
  0x1a   :  { %108 = vrot.lane.b32.xlu0 %v1794_v1, %s1727_s20 }
  0x1c   :  { %329 = vrot.lane.b32.xlu1 %v1789_v0, %s1728_s23 }
  0x1e   :  { %333 = vrot.lane.b32.xlu0 %v1801_v3, %s1728_s23 }
  0x20   :  { %65 = vbcast.lane.b32.xlu1 %v63_v12, 256 }
  0x22   :  { %303 = vbcast.lane.b32.xlu0 %v297_v14, 264 }
  0x24   :  { %314 = vbcast.lane.b32.xlu1 %v308_v15, 264 }
  0x26   :  { %327 = vrot.lane.b32.xlu0 %v1810_v9, %s1728_s23 }
  0x28   :  { %331 = vrot.lane.b32.xlu1 %v1794_v1, %s1728_s23 }
  0x2a   :  { %358 = vrot.lane.b32.xlu0 %v1789_v0, %s1729_s26 }
  0x2c   :  { %362 = vrot.lane.b32.xlu1 %v1801_v3, %s1729_s26 }
  0x2e   :  { %299 = vbcast.lane.b32.xlu0 %v297_v14, 256 }
  0x30   :  { %310 = vbcast.lane.b32.xlu1 %v308_v15, 256 }
  0x32   :  { %325 = vbcast.lane.b32.xlu0 %v319_v17, 264 }
  0x34   :  { %356 = vrot.lane.b32.xlu1 %v1810_v9, %s1729_s26 }
  0x36   :  { %360 = vrot.lane.b32.xlu0 %v1794_v1, %s1729_s26  ;;  %s1479_s26 = sshll.u32 %s1733_s25, 4  ;;  %s1480_s26 = int_to_ptr.vmem [resolvable:$true] %s1479_s26 }
  0x37   :  { %s1704_s1 = scalar_lea.vmem %s1480_s26, 512  ;;  %p1709_p1 = scmp.lt.s32.totalorder %s1480_s26, %s1480_s26 }
  0x38   :  { %581 = vrot.lane.b32.xlu1 %v1789_v0, %s1730_s29  ;;  %p1705_p0 = scmp.ne.s32.totalorder %s1480_s26, %s1704_s1  ;;  %p1710_p2 = scmp.lt.s32.totalorder %s1704_s1, %s1704_s1 }
  0x3a   :  { %585 = vrot.lane.b32.xlu0 %v1801_v3, %s1730_s29  ;;  %p1711_p3 = por %p1710_p2, %p1709_p1 }
  0x3c   :  { %321 = vbcast.lane.b32.xlu1 %v319_v17, 256  ;;  %p1712_p4 = pnand %p1711_p3, %p1705_p0 }
  0x3e   :  { %555 = vbcast.lane.b32.xlu0 %v549_v19, 264 }
  0x40   :  { %566 = vbcast.lane.b32.xlu1 %v560_v20, 264 }
  0x42   :  { %579 = vrot.lane.b32.xlu0 %v1810_v9, %s1730_s29 }
  0x44   :  { %583 = vrot.lane.b32.xlu1 %v1794_v1, %s1730_s29 }
  0x46   :  { %610 = vrot.lane.b32.xlu0 %v1789_v0, %s1731_s30 }
  0x48   :  { %614 = vrot.lane.b32.xlu1 %v1801_v3, %s1731_s30 }
  0x4a   :  { %551 = vbcast.lane.b32.xlu0 %v549_v19, 256 }
  0x4c   :  { %562 = vbcast.lane.b32.xlu1 %v560_v20, 256 }
  0x4e   :  { %577 = vbcast.lane.b32.xlu0 %v571_v21, 264 }
  0x50   :  { %608 = vrot.lane.b32.xlu1 %v1810_v9, %s1731_s30 }
  0x52   :  { %612 = vrot.lane.b32.xlu0 %v1794_v1, %s1731_s30 }
  0x54   :  { %573 = vbcast.lane.b32.xlu1 %v571_v21, 256 }
  0x74   :  { %v78_v22 = vpop.permute.xlu0 %77  ;;  %v80_v23 = vpop.permute.xlu1 %79 }
  0x75   :  { %v89_v30 = vsel %vm87_vm1, 0.0, %v78_v22  ;;  %v90_v53 = vsel %vm87_vm1, 0.0, %v80_v23 }
  0x78   :  { %v82_v24 = vpop.permute.xlu0 %81 }
  0x79   :  { %v91_v31 = vsel %vm87_vm1, 0.0, %v82_v24 }
  0x7a   :  { %v48_v25 = vpop.permute.xlu1 %47 }
  0x7b   :  { %v93_v35 = vmul.f32 %v89_v30, %v48_v25  ;;  %v95_v36 = vmul.f32 %v91_v31, %v48_v25 }
  0x7c   :  { %v76_v26 = vpop.permute.xlu0 %75 }
  0x7d   :  { %v88_v54 = vsel %vm87_vm1, 0.0, %v76_v26 }
  0x7e   :  { %v59_v27 = vpop.permute.xlu1 %58 }
  0x7f   :  { %v97_v33 = vmul.f32 %v59_v27, %v1789_v0  ;;  %v99_v34 = vmul.f32 %v59_v27, %v1801_v3 }
  0x80   :  { %v107_v28 = vpop.permute.xlu0 %106 }
  0x81   :  { %v118_v38 = vsel %vm116_vm2, %v107_v28, 0.0  ;;  %v101_v43 = vadd.f32 %v97_v33, %v93_v35  ;;  %v103_v44 = vadd.f32 %v99_v34, %v95_v36 }
  0x82   :  { %v111_v29 = vpop.permute.xlu1 %110 }
  0x83   :  { %v120_v39 = vsel %vm116_vm2, %v111_v29, 0.0 }
  0x84   :  { %v44_v32 = vpop.permute.xlu0 %43 }
  0x85   :  { %v92_v56 = vmul.f32 %v88_v54, %v44_v32  ;;  %v94_v57 = vmul.f32 %v90_v53, %v44_v32  ;;  %v1502_v54 = vld [vmem:[%s2110_s2 + $0x20] sm:$0xff] }
  0x86   :  { %v55_v37 = vpop.permute.xlu1 %54 }
  0x87   :  { %v96_v50 = vmul.f32 %v55_v37, %v1810_v9  ;;  %v98_v51 = vmul.f32 %v55_v37, %v1794_v1 }
  0x88   :  { %v70_v40 = vpop.permute.xlu0 %69 }
  0x89   :  { %v122_v41 = vmul.f32 %v118_v38, %v70_v40  ;;  %v124_v42 = vmul.f32 %v120_v39, %v70_v40  ;;  %v100_v60 = vadd.f32 %v96_v50, %v92_v56  ;;  %v102_v61 = vadd.f32 %v98_v51, %v94_v57 }
  0x8a   :  { %v105_v45 = vpop.permute.xlu1 %104 }
  0x8b   :  { %v126_v46 = vadd.f32 %v122_v41, %v101_v43  ;;  %v128_v47 = vadd.f32 %v124_v42, %v103_v44  ;;  %v117_v58 = vsel %vm116_vm2, %v105_v45, 0.0 }
  0x8c   :  { %v109_v48 = vpop.permute.xlu0 %108 }
  0x8d   :  { %1568 = vmatprep.subr.mxu0 %v126_v46  ;;  %1575 = vmatprep.subr.mxu1 %v128_v47  ;;  %v119_v55 = vsel %vm116_vm2, %v109_v48, 0.0 }
  0x8e   :  { %1569 = vmatpush3.msra.mxu0 %v126_v46  ;;  %1576 = vmatpush3.msra.mxu1 %v128_v47  ;;  %v330_v49 = vpop.permute.xlu1 %329 }
  0x8f   :  { %v341_v19 = vsel %vm339_vm3, 0.0, %v330_v49 }
  0x90   :  { %v334_v52 = vpop.permute.xlu0 %333 }
  0x91   :  { %v343_v13 = vsel %vm339_vm3, 0.0, %v334_v52  ;;  %v1496_v52 = vld [vmem:[%s2110_s2 + $0x18] sm:$0xff] }
  0x92   :  { %v66_v59 = vpop.permute.xlu1 %65 }
  0x93   :  { %v121_v62 = vmul.f32 %v117_v58, %v66_v59  ;;  %v123_v63 = vmul.f32 %v119_v55, %v66_v59 }
  0x94   :  { %v304_v2 = vpop.permute.xlu0 %303 }
  0x95   :  { %v125_v4 = vadd.f32 %v121_v62, %v100_v60  ;;  %v127_v5 = vadd.f32 %v123_v63, %v102_v61  ;;  %v347_v16 = vmul.f32 %v343_v13, %v304_v2  ;;  %v345_v20 = vmul.f32 %v341_v19, %v304_v2 }
  0x96   :  { %v315_v6 = vpop.permute.xlu1 %314 }
  0x97   :  { %1577 = vmatprep.subr.mxu1 %v127_v5  ;;  %1570 = vmatprep.subr.mxu0 %v125_v4  ;;  %v349_v17 = vmul.f32 %v315_v6, %v1789_v0  ;;  %v351_v18 = vmul.f32 %v315_v6, %v1801_v3 }
  0x98   :  { %v328_v8 = vpop.permute.xlu0 %327  ;;  %1571 = vmatpush3.msra.mxu0 %v125_v4  ;;  %1578 = vmatpush3.msra.mxu1 %v127_v5 }
  0x99   :  { %1573 = vmatmul.mubr.msk.f32.vlgmr.msra.gmra.mxu0 %vm131_vm0, %v130_v7  ;;  %1580 = vmatmul.mubr.msk.f32.vlgmr.msra.gmra.mxu1 %vm131_vm0, %v130_v7  ;;  %v353_v25 = vadd.f32 %v349_v17, %v345_v20  ;;  %v355_v26 = vadd.f32 %v351_v18, %v347_v16  ;;  %v340_v37 = vsel %vm339_vm3, 0.0, %v328_v8 }
  0x9a   :  { %v332_v11 = vpop.permute.xlu1 %331  ;;  %1586 = vmatprep.mubr.msk.f32.mxu0 %vm131_vm0, %v1495_v10  ;;  %1593 = vmatprep.mubr.msk.f32.mxu1 %vm131_vm0, %v1495_v10 }
  0x9b   :  { %v342_v38 = vsel %vm339_vm3, 0.0, %v332_v11 }
  0x9c   :  { %v359_v12 = vpop.permute.xlu0 %358 }
  0x9d   :  { %v370_v22 = vsel %vm368_vm4, %v359_v12, 0.0 }
  0x9e   :  { %v363_v14 = vpop.permute.xlu1 %362 }
  0x9f   :  { %v372_v23 = vsel %vm368_vm4, %v363_v14, 0.0 }
  0xa0   :  { %v300_v15 = vpop.permute.xlu0 %299 }
  0xa1   :  { %v344_v40 = vmul.f32 %v340_v37, %v300_v15  ;;  %v346_v41 = vmul.f32 %v342_v38, %v300_v15 }
  0xa2   :  { %v311_v21 = vpop.permute.xlu1 %310 }
  0xa3   :  { %v348_v34 = vmul.f32 %v311_v21, %v1810_v9  ;;  %v350_v35 = vmul.f32 %v311_v21, %v1794_v1 }
  0xa4   :  { %v326_v24 = vpop.permute.xlu0 %325 }
  0xa5   :  { %v374_v27 = vmul.f32 %v370_v22, %v326_v24  ;;  %v376_v28 = vmul.f32 %v372_v23, %v326_v24  ;;  %v352_v44 = vadd.f32 %v348_v34, %v344_v40  ;;  %v354_v45 = vadd.f32 %v350_v35, %v346_v41 }
  0xa6   :  { %v357_v31 = vpop.permute.xlu1 %356 }
  0xa7   :  { %v378_v29 = vadd.f32 %v374_v27, %v353_v25  ;;  %v380_v30 = vadd.f32 %v376_v28, %v355_v26  ;;  %v369_v42 = vsel %vm368_vm4, %v357_v31, 0.0  ;;  %v1503_v28 = vld [vmem:[%s2110_s2 + $0x28] sm:$0xff] }
  0xa8   :  { %v361_v32 = vpop.permute.xlu0 %360 }
  0xa9   :  { %1582 = vmatprep.subr.mxu0 %v378_v29  ;;  %1589 = vmatprep.subr.mxu1 %v380_v30  ;;  %v371_v39 = vsel %vm368_vm4, %v361_v32, 0.0 }
  0xaa   :  { %1583 = vmatpush3.msra.mxu0 %v378_v29  ;;  %1590 = vmatpush3.msra.mxu1 %v380_v30  ;;  %v582_v33 = vpop.permute.xlu1 %581  ;;  %v1732_v29 = vmov 0  }
  0xab   :  { %v593_v63 = vsel %vm591_vm5, 0.0, %v582_v33  ;;  %1662 = vset.pattern.permute.xlu1 %v1732_v29  ;;  %1663 = vset.pattern.permute.xlu0 %v1732_v29 }
  0xac   :  { %v586_v36 = vpop.permute.xlu0 %585 }
  0xad   :  { %v595_v57 = vsel %vm591_vm5, 0.0, %v586_v36 }
  0xae   :  { %v322_v43 = vpop.permute.xlu1 %321 }
  0xaf   :  { %v373_v46 = vmul.f32 %v369_v42, %v322_v43  ;;  %v375_v47 = vmul.f32 %v371_v39, %v322_v43 }
  0xb0   :  { %v556_v48 = vpop.permute.xlu0 %555 }
  0xb1   :  { %v377_v49 = vadd.f32 %v373_v46, %v352_v44  ;;  %v379_v50 = vadd.f32 %v375_v47, %v354_v45  ;;  %v599_v60 = vmul.f32 %v595_v57, %v556_v48  ;;  %v597_v2 = vmul.f32 %v593_v63, %v556_v48 }
  0xb2   :  { %v567_v51 = vpop.permute.xlu1 %566 }
  0xb3   :  { %1591 = vmatprep.subr.mxu1 %v379_v50  ;;  %1584 = vmatprep.subr.mxu0 %v377_v49  ;;  %v601_v61 = vmul.f32 %v567_v51, %v1789_v0  ;;  %v603_v62 = vmul.f32 %v567_v51, %v1801_v3 }
  0xb4   :  { %v580_v53 = vpop.permute.xlu0 %579  ;;  %1585 = vmatpush3.msra.mxu0 %v377_v49  ;;  %1592 = vmatpush3.msra.mxu1 %v379_v50  ;;  %v834_v50 = vld [vmem:[%s2111_s3 + $0x8] sm:$0xff] }
  0xb5   :  { %1587 = vmatmul.mubr.msk.f32.vlgmr.msra.gmra.mxu0 %vm131_vm0, %v1496_v52  ;;  %1594 = vmatmul.mubr.msk.f32.vlgmr.msra.gmra.mxu1 %vm131_vm0, %v1496_v52  ;;  %v605_v8 = vadd.f32 %v601_v61, %v597_v2  ;;  %v607_v10 = vadd.f32 %v603_v62, %v599_v60  ;;  %v592_v17 = vsel %vm591_vm5, 0.0, %v580_v53 }
  0xb6   :  { %v584_v55 = vpop.permute.xlu1 %583  ;;  %1600 = vmatprep.mubr.msk.f32.mxu0 %vm131_vm0, %v1502_v54  ;;  %1607 = vmatprep.mubr.msk.f32.mxu1 %vm131_vm0, %v1502_v54 }
  0xb7   :  { %v594_v18 = vsel %vm591_vm5, 0.0, %v584_v55 }
  0xb8   :  { %v611_v56 = vpop.permute.xlu0 %610 }
  0xb9   :  { %v622_v5 = vsel %vm620_vm6, %v611_v56, 0.0 }
  0xba   :  { %v615_v58 = vpop.permute.xlu1 %614 }
  0xbb   :  { %v624_v6 = vsel %vm620_vm6, %v615_v58, 0.0 }
  0xbc   :  { %v552_v59 = vpop.permute.xlu0 %551 }
  0xbd   :  { %v596_v20 = vmul.f32 %v592_v17, %v552_v59  ;;  %v598_v21 = vmul.f32 %v594_v18, %v552_v59 }
  0xbe   :  { %v563_v4 = vpop.permute.xlu1 %562 }
  0xbf   :  { %v600_v0 = vmul.f32 %v563_v4, %v1810_v9  ;;  %v602_v3 = vmul.f32 %v563_v4, %v1794_v1 }
  0xc0   :  { %v578_v7 = vpop.permute.xlu0 %577 }
  0xc1   :  { %v626_v11 = vmul.f32 %v622_v5, %v578_v7  ;;  %v628_v12 = vmul.f32 %v624_v6, %v578_v7  ;;  %v604_v24 = vadd.f32 %v600_v0, %v596_v20  ;;  %v606_v9 = vadd.f32 %v602_v3, %v598_v21  ;;  %v836_v6 = vld [vmem:[%s2112_s4 + $0x8] sm:$0xff]  ;;  %v835_v7 = vld [vmem:[%s2112_s4] sm:$0xff] }
  0xc2   :  { %v609_v15 = vpop.permute.xlu1 %608  ;;  %v880_v0 = vld [vmem:[%s2116_s8 + $0x8] sm:$0xff] }
  0xc3   :  { %v630_v13 = vadd.f32 %v626_v11, %v605_v8  ;;  %v632_v14 = vadd.f32 %v628_v12, %v607_v10  ;;  %v621_v22 = vsel %vm620_vm6, %v609_v15, 0.0  ;;  %v833_v8 = vld [vmem:[%s2111_s3] sm:$0xff]  ;;  %v876_v10 = vld [vmem:[%s2114_s6 + $0x18] sm:$0xff]  ;;  %v875_v11 = vld [vmem:[%s2114_s6 + $0x10] sm:$0xff] }
  0xc4   :  { %v613_v16 = vpop.permute.xlu0 %612  ;;  %v874_v12 = vld [vmem:[%s2114_s6 + $0x8] sm:$0xff]  ;;  %v879_v15 = vld [vmem:[%s2116_s8] sm:$0xff] }
  0xc5   :  { %1596 = vmatprep.subr.mxu0 %v630_v13  ;;  %1603 = vmatprep.subr.mxu1 %v632_v14  ;;  %v623_v19 = vsel %vm620_vm6, %v613_v16, 0.0 }
  0xc6   :  { %1604 = vmatpush3.msra.mxu1 %v632_v14  ;;  %1597 = vmatpush3.msra.mxu0 %v630_v13  ;;  %v574_v23 = vpop.permute.xlu1 %573  ;;  %v873_v13 = vld [vmem:[%s2114_s6] sm:$0xff] }
  0xc7   :  { %v625_v25 = vmul.f32 %v621_v22, %v574_v23  ;;  %v627_v1 = vmul.f32 %v623_v19, %v574_v23  ;;  %v869_v14 = vld [vmem:[%s2113_s5] sm:$0xff] }
  0xc9   :  { %v629_v26 = vadd.f32 %v625_v25, %v604_v24  ;;  %v631_v27 = vadd.f32 %v627_v1, %v606_v9 }
  0xcb   :  { %1598 = vmatprep.subr.mxu0 %v629_v26  ;;  %1605 = vmatprep.subr.mxu1 %v631_v27 }
  0xcc   :  { %1599 = vmatpush3.msra.mxu0 %v629_v26  ;;  %1606 = vmatpush3.msra.mxu1 %v631_v27 }
  0xcd   :  { %1601 = vmatmul.mubr.msk.f32.vlgmr.msra.gmra.mxu0 %vm131_vm0, %v1503_v28  ;;  %1608 = vmatmul.mubr.msk.f32.vlgmr.msra.gmra.mxu1 %vm131_vm0, %v1503_v28 }
  0xce   :  { %1614 = vmatprep.mubr.msk.f32.mxu0 %vm131_vm0, %v869_v14 }
 0x159   :  { %v1574_v30 = vpop.f32.mrf.mxu0  ;;  %v1581_v31 = vpop.f32.mrf.mxu1 }
 0x15b   :  { %v204_v32 = vpop.f32.mrf.mxu0  ;;  %v279_v33 = vpop.f32.mrf.mxu1 }
 0x175   :  { %v1588_v34 = vpop.f32.mrf.mxu0  ;;  %v1595_v35 = vpop.f32.mrf.mxu1 }
 0x176   :  { %v541_v38 = vadd.f32 %v1588_v34, %v1574_v30  ;;  %v543_v39 = vadd.f32 %v1595_v35, %v1581_v31 }
 0x177   :  { %v456_v36 = vpop.f32.mrf.mxu0  ;;  %v531_v37 = vpop.f32.mrf.mxu1 }
 0x178   :  { %v540_v45 = vadd.f32 %v456_v36, %v204_v32  ;;  %v542_v48 = vadd.f32 %v531_v37, %v279_v33 }
 0x18d   :  { %v1602_v40 = vpop.f32.mrf.mxu0  ;;  %v1609_v41 = vpop.f32.mrf.mxu1 }
 0x18e   :  { %v793_v42 = vadd.f32 %v1602_v40, %v541_v38  ;;  %v795_v43 = vadd.f32 %v1609_v41, %v543_v39  ;;  %v870_v39 = vld [vmem:[%s2113_s5 + $0x8] sm:$0xff]  ;;  %v871_v41 = vld [vmem:[%s2113_s5 + $0x10] sm:$0xff] }
 0x18f   :  { %v708_v44 = vpop.f32.mrf.mxu0  ;;  %v783_v47 = vpop.f32.mrf.mxu1 }
 0x190   :  { %802 = vadd.xlane.f32.xlu1 %v795_v43  ;;  %798 = vadd.xlane.f32.xlu0 %v793_v42  ;;  %v792_v46 = vadd.f32 %v708_v44, %v540_v45  ;;  %v794_v49 = vadd.f32 %v783_v47, %v542_v48  ;;  %v1958_v44 = vld [vmem:[%s2115_s7] sm:$0xff] }
 0x191   :  { %1628 = vmatprep.mubr.msk.f32.mxu1 %vm1116_vm7, %v1958_v44 }
 0x194   :  { %796 = vadd.xlane.f32.xlu0 %v792_v46 }
 0x198   :  { %800 = vadd.xlane.f32.xlu0 %v794_v49 }
 0x1a1   :  { %848 = vperm.xlu1 %1662, %v834_v50  }
 0x219   :  { %v803_v51 = vpop.xlane.xlu1 %802  ;;  %v799_v52 = vpop.xlane.xlu0 %798 }
 0x21a   :  { %v805_v53 = vadd.f32 %v803_v51, %v799_v52 }
 0x21c   :  { %v808_v54 = vmul.f32 0.00390625, %v805_v53 }
 0x21d   :  { %v797_v55 = vpop.xlane.xlu0 %796  ;;  %v849_v3 = vpop.permute.xlu1 %848 }
 0x21e   :  { %v810_v56 = vsub.f32 %v793_v42, %v808_v54  ;;  %v812_v57 = vsub.f32 %v795_v43, %v808_v54  ;;  %v872_v43 = vld [vmem:[%s2113_s5 + $0x18] sm:$0xff] }
 0x220   :  { %v814_v58 = vmul.f32 %v810_v56, %v810_v56  ;;  %v816_v59 = vmul.f32 %v812_v57, %v812_v57 }
 0x221   :  { %v801_v60 = vpop.xlane.xlu0 %800 }
 0x222   :  { %v804_v61 = vadd.f32 %v801_v60, %v797_v55  ;;  %819 = vadd.xlane.f32.xlu1 %v814_v58  ;;  %823 = vadd.xlane.f32.xlu0 %v816_v59 }
 0x224   :  { %v807_v62 = vmul.f32 0.00390625, %v804_v61 }
 0x226   :  { %v809_v63 = vsub.f32 %v792_v46, %v807_v62  ;;  %v811_v2 = vsub.f32 %v794_v49, %v807_v62 }
 0x228   :  { %v815_v4 = vmul.f32 %v811_v2, %v811_v2  ;;  %v813_v5 = vmul.f32 %v809_v63, %v809_v63 }
 0x22a   :  { %821 = vadd.xlane.f32.xlu0 %v815_v4  ;;  %817 = vadd.xlane.f32.xlu1 %v813_v5 }
 0x23b   :  { %862 = vperm.xlu1 %1662, %v836_v6  }
 0x23f   :  { %857 = vperm.xlu1 %1662, %v835_v7  }
 0x240   :  { %843 = vperm.xlu0 %1663, %v833_v8  }
 0x243   :  { %898 = vperm.xlu1 %1662, %v876_v10  }
 0x247   :  { %893 = vperm.xlu1 %1662, %v875_v11  }
 0x24b   :  { %888 = vperm.xlu1 %1662, %v874_v12  }
 0x24f   :  { %883 = vperm.xlu1 %1662, %v873_v13  }
 0x253   :  { %1108 = vperm.xlu1 %1662, %v879_v15  }
 0x257   :  { %1113 = vperm.xlu1 %1662, %v880_v0  }
 0x2ab   :  { %v820_v16 = vpop.xlane.xlu1 %819  ;;  %v824_v17 = vpop.xlane.xlu0 %823 }
 0x2ac   :  { %v826_v18 = vadd.f32 %v824_v17, %v820_v16 }
 0x2ae   :  { %v828_v19 = vmul.f32 0.00390625, %v826_v18 }
 0x2b0   :  { %v830_v20 = vadd.f32 1e-05, %v828_v19 }
 0x2b2   :  { %1664 = vrsqrt.f32 %v830_v20 }
 0x2b3   :  { %v818_v21 = vpop.xlane.xlu1 %817  ;;  %v822_v22 = vpop.xlane.xlu0 %821 }
 0x2b4   :  { %v825_v23 = vadd.f32 %v822_v22, %v818_v21 }
 0x2b6   :  { %v827_v24 = vmul.f32 0.00390625, %v825_v23 }
 0x2b7   :  { %v863_v27 = vpop.permute.xlu1 %862 }
 0x2b8   :  { %v829_v9 = vadd.f32 1e-05, %v827_v24 }
 0x2ba   :  { %1666 = vrsqrt.f32 %v829_v9 }
 0x2bb   :  { %v844_v31 = vpop.permute.xlu0 %843  ;;  %v858_v36 = vpop.permute.xlu1 %857 }
 0x2bf   :  { %v1665_v25 = vpop.eup %1664  ;;  %v899_v45 = vpop.permute.xlu1 %898 }
 0x2c0   :  { %v838_v1 = vmul.f32 %v1665_v25, %v810_v56  ;;  %v840_v29 = vmul.f32 %v1665_v25, %v812_v57 }
 0x2c2   :  { %v852_v26 = vmul.f32 %v849_v3, %v838_v1  ;;  %v854_v34 = vmul.f32 %v849_v3, %v840_v29 }
 0x2c3   :  { %v894_v46 = vpop.permute.xlu1 %893 }
 0x2c4   :  { %v866_v28 = vadd.f32 %v863_v27, %v852_v26  ;;  %v868_v40 = vadd.f32 %v863_v27, %v854_v34 }
 0x2c6   :  { %1610 = vmatprep.subr.mxu0 %v866_v28 }
 0x2c7   :  { %v1667_v30 = vpop.eup %1666  ;;  %1611 = vmatpush3.msra.mxu0 %v866_v28  ;;  %v889_v47 = vpop.permute.xlu1 %888 }
 0x2c8   :  { %v837_v32 = vmul.f32 %v1667_v30, %v809_v63  ;;  %v839_v33 = vmul.f32 %v1667_v30, %v811_v2 }
 0x2ca   :  { %v851_v35 = vmul.f32 %v844_v31, %v837_v32  ;;  %v853_v37 = vmul.f32 %v844_v31, %v839_v33 }
 0x2cb   :  { %v884_v50 = vpop.permute.xlu1 %883 }
 0x2cc   :  { %v865_v38 = vadd.f32 %v858_v36, %v851_v35  ;;  %v867_v42 = vadd.f32 %v858_v36, %v853_v37 }
 0x2ce   :  { %1612 = vmatprep.subr.mxu0 %v865_v38 }
 0x2cf   :  { %1613 = vmatpush3.msra.mxu0 %v865_v38 }
 0x2d0   :  { %1615 = vmatmul.mubr.msk.f32.vlgmr.msra.gmra.mxu0 %vm131_vm0, %v870_v39  ;;  %1631 = vmatprep.subr.mxu0 %v868_v40 }
 0x2d1   :  { %1632 = vmatpush3.msra.mxu0 %v868_v40  ;;  %1617 = vmatprep.mubr.msk.f32.mxu0 %vm131_vm0, %v871_v41 }
 0x2d2   :  { %1633 = vmatprep.subr.mxu0 %v867_v42 }
 0x2d3   :  { %1634 = vmatpush3.msra.mxu0 %v867_v42 }
 0x2d4   :  { %1618 = vmatmul.mubr.msk.f32.gmra.mxu0 %vm131_vm0, %v872_v43 }
 0x2d5   :  { %1635 = vmatprep.mubr.msk.f32.mxu0 %vm131_vm0, %v869_v14 }
 0x2d8   :  { %1636 = vmatmul.mubr.msk.f32.vlgmr.msra.gmra.mxu0 %vm131_vm0, %v870_v39 }
 0x2d9   :  { %1638 = vmatprep.mubr.msk.f32.mxu0 %vm131_vm0, %v871_v41 }
 0x2dc   :  { %1639 = vmatmul.mubr.msk.f32.gmra.mxu0 %vm131_vm0, %v872_v43 }
 0x390   :  { %v1616_v48 = vpop.f32.mrf.mxu0 }
 0x391   :  { %v1962_v49 = vadd.f32 %v1616_v48, %v889_v47 }
 0x392   :  { %v979_v51 = vpop.f32.mrf.mxu0 }
 0x393   :  { %v1965_v52 = vmul.f32 0.70710677, %v1962_v49  ;;  %v1967_v53 = vadd.f32 %v979_v51, %v884_v50 }
 0x394   :  { %v1619_v54 = vpop.f32.mrf.mxu0 }
 0x395   :  { %v1007_v55 = vand.u32 2147483647, %v1965_v52  ;;  %v1971_v56 = vmul.f32 0.70710677, %v1967_v53  ;;  %v1973_v57 = vadd.f32 %v1619_v54, %v899_v45  ;;  %vm1087_vm8 = vcmp.ge.f32.partialorder %v1965_v52, 0.0 }
 0x396   :  { %v989_v58 = vpop.f32.mrf.mxu0 }
 0x397   :  { %v1011_v59 = vmul.f32 0.3275911, %v1007_v55  ;;  %v1006_v60 = vand.u32 2147483647, %v1971_v56  ;;  %v1977_v61 = vmul.f32 0.70710677, %v1973_v57  ;;  %v1979_v62 = vadd.f32 %v989_v58, %v894_v46 }
 0x398   :  { %v1637_v63 = vpop.f32.mrf.mxu0  ;;  %v1063_v3 = vsub.f32 0.0, %v1007_v55  ;;  %vm1086_vm9 = vcmp.ge.f32.partialorder %v1971_v56, 0.0 }
 0x399   :  { %v1015_v2 = vadd.f32 1.0, %v1011_v59  ;;  %v1010_v4 = vmul.f32 0.3275911, %v1006_v60  ;;  %v1009_v5 = vand.u32 2147483647, %v1977_v61  ;;  %v1986_v13 = vadd.f32 %v1637_v63, %v889_v47 }
 0x39a   :  { %v1983_v6 = vmul.f32 0.70710677, %v1979_v62  ;;  %v1266_v7 = vpop.f32.mrf.mxu0  ;;  %v1067_v22 = vmul.f32 %v1063_v3, %v1007_v55  ;;  %v1062_v9 = vsub.f32 0.0, %v1006_v60  ;;  %vm1089_vm10 = vcmp.ge.f32.partialorder %v1977_v61, 0.0 }
 0x39b   :  { %1668 = vrcp.f32 %v1015_v2  ;;  %v1014_v8 = vadd.f32 1.0, %v1010_v4  ;;  %v1013_v10 = vmul.f32 0.3275911, %v1009_v5  ;;  %v1988_v14 = vadd.f32 %v1266_v7, %v884_v50 }
 0x39c   :  { %v1008_v11 = vand.u32 2147483647, %v1983_v6  ;;  %v1640_v12 = vpop.f32.mrf.mxu0  ;;  %v1991_v16 = vmul.f32 0.70710677, %v1986_v13  ;;  %v1065_v27 = vsub.f32 0.0, %v1009_v5  ;;  %v1066_v33 = vmul.f32 %v1062_v9, %v1006_v60 }
 0x39d   :  { %1670 = vrcp.f32 %v1014_v8  ;;  %v1017_v15 = vadd.f32 1.0, %v1013_v10  ;;  %v1995_v20 = vmul.f32 0.70710677, %v1988_v14  ;;  %v1997_v21 = vadd.f32 %v1640_v12, %v899_v45 }
 0x39e   :  { %v1012_v0 = vmul.f32 0.3275911, %v1008_v11  ;;  %v1276_v18 = vpop.f32.mrf.mxu0  ;;  %v1294_v19 = vand.u32 2147483647, %v1991_v16  ;;  %v1072_v30 = vmul.f32 1.442695, %v1067_v22  ;;  %v1069_v39 = vmul.f32 %v1065_v27, %v1009_v5 }
 0x39f   :  { %1672 = vrcp.f32 %v1017_v15  ;;  %v1999_v24 = vadd.f32 %v1276_v18, %v894_v46  ;;  %v1293_v25 = vand.u32 2147483647, %v1995_v20  ;;  %v2003_v1 = vmul.f32 0.70710677, %v1997_v21 }
 0x3a0   :  { %v1016_v17 = vadd.f32 1.0, %v1012_v0  ;;  %v1298_v23 = vmul.f32 0.3275911, %v1294_v19  ;;  %v1064_v34 = vsub.f32 0.0, %v1008_v11  ;;  %v1350_v42 = vsub.f32 0.0, %v1294_v19 }
 0x3a1   :  { %v1297_v28 = vmul.f32 0.3275911, %v1293_v25  ;;  %v1296_v29 = vand.u32 2147483647, %v2003_v1  ;;  %v2007_v31 = vmul.f32 0.70710677, %v1999_v24 }
 0x3a2   :  { %1674 = vrcp.f32 %v1016_v17  ;;  %v1302_v26 = vadd.f32 1.0, %v1298_v23  ;;  %v1070_v46 = vmul.f32 1.442695, %v1066_v33  ;;  %v1068_v47 = vmul.f32 %v1064_v34, %v1008_v11 }
 0x3a3   :  { %v1301_v35 = vadd.f32 1.0, %v1297_v28  ;;  %v1300_v36 = vmul.f32 0.3275911, %v1296_v29  ;;  %v1295_v37 = vand.u32 2147483647, %v2007_v31  ;;  %v1349_v51 = vsub.f32 0.0, %v1293_v25 }
 0x3a4   :  { %1676 = vrcp.f32 %v1302_v26  ;;  %v1076_v58 = vmul.f32 1.442695, %v1069_v39  ;;  %v1354_v63 = vmul.f32 %v1350_v42, %v1294_v19  ;;  %v1074_v5 = vmul.f32 1.442695, %v1068_v47 }
 0x3a5   :  { %1678 = vrcp.f32 %v1301_v35  ;;  %v1304_v40 = vadd.f32 1.0, %v1300_v36  ;;  %v1299_v43 = vmul.f32 0.3275911, %v1295_v37  ;;  %v1353_v10 = vmul.f32 %v1349_v51, %v1293_v25 }
 0x3a6   :  { %1680 = vpow2.f32 %v1072_v30  ;;  %v1352_v15 = vsub.f32 0.0, %v1296_v29  ;;  %v1359_v17 = vmul.f32 1.442695, %v1354_v63  ;;  %v1351_v23 = vsub.f32 0.0, %v1295_v37 }
 0x3a7   :  { %1682 = vrcp.f32 %v1304_v40  ;;  %v1303_v54 = vadd.f32 1.0, %v1299_v43  ;;  %v1357_v25 = vmul.f32 1.442695, %v1353_v10  ;;  %vm1088_vm11 = vcmp.ge.f32.partialorder %v1983_v6, 0.0 }
 0x3a8   :  { %v2009_v32 = vpop.eup %1668  ;;  %v1356_v33 = vmul.f32 %v1352_v15, %v1296_v29  ;;  %v1355_v42 = vmul.f32 %v1351_v23, %v1295_v37  ;;  %v1000_v6 = vmul.f32 0.5, %v1979_v62  ;;  %vm1376_vm12 = vcmp.ge.f32.partialorder %v2003_v1, 0.0 }
 0x3a9   :  { %v1027_v38 = vmul.f32 1.0614054, %v2009_v32  ;;  %1684 = vrcp.f32 %v1303_v54  ;;  %vm1374_vm13 = vcmp.ge.f32.partialorder %v1991_v16, 0.0  ;;  %vm1373_vm14 = vcmp.ge.f32.partialorder %v1995_v20, 0.0 }
 0x3aa   :  { %v2013_v41 = vpop.eup %1670  ;;  %1686 = vpow2.f32 %v1070_v46  ;;  %vm1375_vm15 = vcmp.ge.f32.partialorder %v2007_v31, 0.0  ;;  %v1287_v16 = vmul.f32 0.5, %v1999_v24  ;;  %v1285_v20 = vmul.f32 0.5, %v1988_v14  ;;  %v1109_v24 = vpop.permute.xlu1 %1108 }
 0x3ab   :  { %v1031_v45 = vadd.f32 -1.4531521, %v1027_v38  ;;  %v1026_v48 = vmul.f32 1.0614054, %v2013_v41  ;;  %1688 = vpow2.f32 %v1076_v58 }
 0x3ac   :  { %v2016_v50 = vpop.eup %1672  ;;  %1690 = vpow2.f32 %v1074_v5 }
 0x3ad   :  { %v1035_v55 = vmul.f32 %v2009_v32, %v1031_v45  ;;  %v1029_v59 = vmul.f32 1.0614054, %v2016_v50  ;;  %v1030_v60 = vadd.f32 -1.4531521, %v1026_v48  ;;  %1692 = vpow2.f32 %v1359_v17 }
 0x3ae   :  { %1694 = vpow2.f32 %v1357_v25 }
 0x3af   :  { %v1039_v2 = vadd.f32 1.4214138, %v1035_v55  ;;  %v2020_v4 = vpop.eup %1674  ;;  %v1033_v7 = vadd.f32 -1.4531521, %v1029_v59  ;;  %v1034_v8 = vmul.f32 %v2013_v41, %v1030_v60  ;;  %v1363_v55 = vmul.f32 1.442695, %v1356_v33 }
 0x3b0   :  { %v1028_v11 = vmul.f32 1.0614054, %v2020_v4 }
 0x3b1   :  { %v1043_v12 = vmul.f32 %v2009_v32, %v1039_v2  ;;  %v1037_v0 = vmul.f32 %v2016_v50, %v1033_v7  ;;  %v1038_v3 = vadd.f32 1.4214138, %v1034_v8  ;;  %v2026_v22 = vpop.eup %1676  ;;  %v1361_v8 = vmul.f32 1.442695, %v1355_v42 }
 0x3b2   :  { %v1032_v18 = vadd.f32 -1.4531521, %v1028_v11  ;;  %v1314_v30 = vmul.f32 1.0614054, %v2026_v22  ;;  %v2033_v36 = vpop.eup %1678  ;;  %1696 = vpow2.f32 %v1363_v55 }
 0x3b3   :  { %v1047_v19 = vadd.f32 -0.28449672, %v1043_v12  ;;  %v1041_v9 = vadd.f32 1.4214138, %v1037_v0  ;;  %v1042_v26 = vmul.f32 %v2013_v41, %v1038_v3  ;;  %v1313_v46 = vmul.f32 1.0614054, %v2033_v36  ;;  %v1681_v47 = vpop.eup %1680 }
 0x3b4   :  { %v1036_v27 = vmul.f32 %v2020_v4, %v1032_v18  ;;  %v1318_v40 = vadd.f32 -1.4531521, %v1314_v30  ;;  %v2040_v54 = vpop.eup %1682  ;;  %1698 = vpow2.f32 %v1361_v8 }
 0x3b5   :  { %v1051_v28 = vmul.f32 %v2009_v32, %v1047_v19  ;;  %v1045_v34 = vmul.f32 %v2016_v50, %v1041_v9  ;;  %v1046_v35 = vadd.f32 -0.28449672, %v1042_v26  ;;  %v1317_v37 = vadd.f32 -1.4531521, %v1313_v46 }
 0x3b6   :  { %v1040_v38 = vadd.f32 1.4214138, %v1036_v27  ;;  %v1322_v51 = vmul.f32 %v2026_v22, %v1318_v40  ;;  %v1316_v2 = vmul.f32 1.0614054, %v2040_v54  ;;  %v2044_v7 = vpop.eup %1684 }
 0x3b7   :  { %v1055_v39 = vadd.f32 0.2548296, %v1051_v28  ;;  %v1049_v43 = vadd.f32 -0.28449672, %v1045_v34  ;;  %v1050_v45 = vmul.f32 %v2013_v41, %v1046_v35  ;;  %v1321_v11 = vmul.f32 %v2033_v36, %v1317_v37  ;;  %v1687_v12 = vpop.eup %1686 }
 0x3b8   :  { %v1044_v48 = vmul.f32 %v2020_v4, %v1040_v38  ;;  %v1326_v5 = vadd.f32 1.4214138, %v1322_v51  ;;  %v1320_v3 = vadd.f32 -1.4531521, %v1316_v2  ;;  %v1315_v17 = vmul.f32 1.0614054, %v2044_v7  ;;  %v1689_v26 = vpop.eup %1688 }
 0x3b9   :  { %v1059_v29 = vmul.f32 %v2009_v32, %v1055_v39  ;;  %v1053_v58 = vmul.f32 %v2016_v50, %v1049_v43  ;;  %v1054_v59 = vadd.f32 0.2548296, %v1050_v45  ;;  %v1325_v9 = vadd.f32 1.4214138, %v1321_v11  ;;  %v1691_v35 = vpop.eup %1690 }
 0x3ba   :  { %v1048_v60 = vadd.f32 -0.28449672, %v1044_v48  ;;  %v1330_v23 = vmul.f32 %v2026_v22, %v1326_v5  ;;  %v1324_v25 = vmul.f32 %v2040_v54, %v1320_v3  ;;  %v1319_v27 = vadd.f32 -1.4531521, %v1315_v17 }
 0x3bb   :  { %v1079_v63 = vmul.f32 %v1681_v47, %v1059_v29  ;;  %v1057_v10 = vadd.f32 0.2548296, %v1053_v58  ;;  %v1058_v32 = vmul.f32 %v2013_v41, %v1054_v59  ;;  %v1329_v34 = vmul.f32 %v2033_v36, %v1325_v9  ;;  %v1693_v29 = vpop.eup %1692 }
 0x3bc   :  { %v1052_v15 = vmul.f32 %v2020_v4, %v1048_v60  ;;  %v1334_v33 = vadd.f32 -0.28449672, %v1330_v23  ;;  %v1328_v38 = vadd.f32 1.4214138, %v1324_v25  ;;  %v1323_v39 = vmul.f32 %v2044_v7, %v1319_v27 }
 0x3bd   :  { %v1083_v0 = vsub.f32 1.0, %v1079_v63  ;;  %v1061_v18 = vmul.f32 %v2016_v50, %v1057_v10  ;;  %v1078_v19 = vmul.f32 %v1687_v12, %v1058_v32  ;;  %v1333_v48 = vadd.f32 -0.28449672, %v1329_v34  ;;  %v1695_v63 = vpop.eup %1694 }
 0x3be   :  { %v1056_v41 = vadd.f32 0.2548296, %v1052_v15  ;;  %v1338_v43 = vmul.f32 %v2026_v22, %v1334_v33  ;;  %v1332_v46 = vmul.f32 %v2040_v54, %v1328_v38  ;;  %v1327_v47 = vadd.f32 1.4214138, %v1323_v39 }
 0x3bf   :  { %v1081_v28 = vmul.f32 %v1689_v26, %v1061_v18  ;;  %v1082_v30 = vsub.f32 1.0, %v1078_v19  ;;  %v1091_v42 = vsub.f32 0.0, %v1083_v0  ;;  %v1001_v51 = vmul.f32 0.5, %v1973_v57 }
 0x3c0   :  { %v1060_v50 = vmul.f32 %v2020_v4, %v1056_v41  ;;  %v1342_v59 = vadd.f32 0.2548296, %v1338_v43  ;;  %v1336_v37 = vadd.f32 -0.28449672, %v1332_v46  ;;  %v1331_v60 = vmul.f32 %v2044_v7, %v1327_v47  ;;  %v1697_v41 = vpop.eup %1696 }
 0x3c1   :  { %v1085_v40 = vsub.f32 1.0, %v1081_v28  ;;  %v1090_v58 = vsub.f32 0.0, %v1082_v30  ;;  %v1337_v8 = vmul.f32 %v2033_v36, %v1333_v48  ;;  %v1095_v57 = vsel %vm1087_vm8, %v1083_v0, %v1091_v42 }
 0x3c2   :  { %v1080_v45 = vmul.f32 %v1691_v35, %v1060_v50  ;;  %v1346_v5 = vmul.f32 %v2026_v22, %v1342_v59  ;;  %v1340_v11 = vmul.f32 %v2040_v54, %v1336_v37  ;;  %v1335_v12 = vadd.f32 -0.28449672, %v1331_v60  ;;  %v1699_v50 = vpop.eup %1698  ;;  %v1114_v37 = vpop.permute.xlu1 %1113 }
 0x3c3   :  { %v1093_v55 = vsub.f32 0.0, %v1085_v40  ;;  %v1094_v61 = vsel %vm1086_vm9, %v1082_v30, %v1090_v58  ;;  %v1341_v3 = vadd.f32 0.2548296, %v1337_v8  ;;  %v1099_v23 = vadd.f32 1.0, %v1095_v57  ;;  %v1701_v8 = vld [vmem:[%s2108_s0] sm:$0xff] }
 0x3c4   :  { %v1084_v4 = vsub.f32 1.0, %v1080_v45  ;;  %v1366_v15 = vmul.f32 %v1693_v29, %v1346_v5  ;;  %v1344_v22 = vadd.f32 0.2548296, %v1340_v11  ;;  %v1339_v9 = vmul.f32 %v2044_v7, %v1335_v12 }
 0x3c5   :  { %v1097_v2 = vsel %vm1089_vm10, %v1085_v40, %v1093_v55  ;;  %v1345_v52 = vmul.f32 %v2033_v36, %v1341_v3  ;;  %v999_v0 = vmul.f32 0.5, %v1962_v49  ;;  %v1098_v26 = vadd.f32 1.0, %v1094_v61  ;;  %v878_v40 = vld [vmem:[%s2115_s7 + $0x8] sm:$0xff]  ;;  %v1702_v61 = vld [vmem:[%s2108_s0 + $0x18] sm:$0xff]  ;;  %v1703_v3 = vld [vmem:[%s2108_s0 + $0x10] sm:$0xff] }
 0x3c6   :  { %v1101_v10 = vadd.f32 1.0, %v1097_v2  ;;  %v1092_v32 = vsub.f32 0.0, %v1084_v4  ;;  %v1348_v56 = vmul.f32 %v2040_v54, %v1344_v22  ;;  %v1343_v27 = vadd.f32 0.2548296, %v1339_v9  ;;  %v1700_v2 = vld [vmem:[%s2108_s0 + $0x8] sm:$0xff] }
 0x3c7   :  { %v1370_v62 = vsub.f32 1.0, %v1366_v15  ;;  %v1365_v28 = vmul.f32 %v1695_v63, %v1345_v52  ;;  %v998_v33 = vmul.f32 0.5, %v1967_v53  ;;  %v1103_v34 = vmul.f32 %v1099_v23, %v999_v0 }
 0x3c8   :  { %v1105_v17 = vmul.f32 %v1101_v10, %v1001_v51  ;;  %v1096_v18 = vsel %vm1088_vm11, %v1084_v4, %v1092_v32  ;;  %v1368_v30 = vmul.f32 %v1697_v41, %v1348_v56  ;;  %v1347_v35 = vmul.f32 %v2044_v7, %v1343_v27 }
 0x3c9   :  { %v1100_v19 = vadd.f32 1.0, %v1096_v18  ;;  %v1369_v36 = vsub.f32 1.0, %v1365_v28  ;;  %v1102_v38 = vmul.f32 %v1098_v26, %v998_v33  ;;  %v1378_v39 = vsub.f32 0.0, %v1370_v62 }
 0x3ca   :  { %1620 = vmatprep.subr.mxu1 %v1105_v17  ;;  %v1372_v49 = vsub.f32 1.0, %v1368_v30  ;;  %v1367_v54 = vmul.f32 %v1699_v50, %v1347_v35  ;;  %v1288_v45 = vmul.f32 0.5, %v1997_v21  ;;  %v1286_v21 = vmul.f32 0.5, %v1986_v13 }
 0x3cb   :  { %1621 = vmatpush3.msra.mxu1 %v1105_v17  ;;  %v1104_v25 = vmul.f32 %v1100_v19, %v1000_v6  ;;  %v1377_v43 = vsub.f32 0.0, %v1369_v36  ;;  %v1382_v48 = vsel %vm1374_vm13, %v1370_v62, %v1378_v39 }
 0x3cc   :  { %v1380_v42 = vsub.f32 0.0, %v1372_v49  ;;  %v1371_v53 = vsub.f32 1.0, %v1367_v54  ;;  %v1386_v58 = vadd.f32 1.0, %v1382_v48 }
 0x3cd   :  { %1622 = vmatprep.subr.mxu1 %v1104_v25  ;;  %v1381_v51 = vsel %vm1373_vm14, %v1369_v36, %v1377_v43 }
 0x3ce   :  { %1623 = vmatpush3.msra.mxu1 %v1104_v25  ;;  %v1384_v7 = vsel %vm1376_vm12, %v1372_v49, %v1380_v42  ;;  %v1379_v47 = vsub.f32 0.0, %v1371_v53  ;;  %v1385_v4 = vadd.f32 1.0, %v1381_v51  ;;  %v1390_v31 = vmul.f32 %v1386_v58, %v1286_v21 }
 0x3cf   :  { %1624 = vmatprep.subr.mxu1 %v1103_v34  ;;  %v1388_v46 = vadd.f32 1.0, %v1384_v7 }
 0x3d0   :  { %1625 = vmatpush3.msra.mxu1 %v1103_v34  ;;  %v1383_v29 = vsel %vm1375_vm15, %v1371_v53, %v1379_v47 }
 0x3d1   :  { %1626 = vmatprep.subr.mxu1 %v1102_v38  ;;  %v1392_v1 = vmul.f32 %v1388_v46, %v1288_v45  ;;  %v1387_v55 = vadd.f32 1.0, %v1383_v29 }
 0x3d2   :  { %1627 = vmatpush3.msra.mxu1 %v1102_v38 }
 0x3d3   :  { %1629 = vmatmul.mubr.msk.f32.vlgmr.msra.gmra.mxu1 %vm1116_vm7, %v878_v40  ;;  %1641 = vmatprep.subr.mxu1 %v1392_v1  ;;  %v1391_v59 = vmul.f32 %v1387_v55, %v1287_v16 }
 0x3d4   :  { %1649 = vmatprep.mubr.msk.f32.mxu1 %vm1116_vm7, %v1958_v44  ;;  %1642 = vmatpush3.msra.mxu1 %v1392_v1  ;;  %v1389_v44 = vmul.f32 %v1385_v4, %v1285_v20 }
 0x3d5   :  { %1643 = vmatprep.subr.mxu1 %v1391_v59 }
 0x3d6   :  { %1644 = vmatpush3.msra.mxu1 %v1391_v59 }
 0x3d7   :  { %1645 = vmatprep.subr.mxu1 %v1390_v31 }
 0x3d8   :  { %1646 = vmatpush3.msra.mxu1 %v1390_v31 }
 0x3d9   :  { %1647 = vmatprep.subr.mxu1 %v1389_v44 }
 0x3da   :  { %1648 = vmatpush3.msra.mxu1 %v1389_v44 }
 0x3db   :  { %1650 = vmatmul.mubr.msk.f32.vlgmr.msra.gmra.mxu1 %vm1116_vm7, %v878_v40 }
 0x493   :  { %v1630_v60 = vpop.f32.mrf.mxu1 }
 0x494   :  { %v1195_v63 = vadd.f32 %v1630_v60, %v1114_v37 }
 0x495   :  { %v1189_v13 = vpop.f32.mrf.mxu1 }
 0x496   :  { %v1199_v14 = vadd.f32 %v1700_v2, %v1195_v63  ;;  %v1190_v5 = vadd.f32 %v1189_v13, %v1109_v24 }
 0x498   :  { %1471 = vst [vmem:[#allocation2 + $0x8] sm:$0xff] %v1199_v14  ;;  %v1198_v10 = vadd.f32 %v1701_v8, %v1190_v5 }
 0x49a   :  { %1470 = vst [vmem:[#allocation2] sm:$0xff] %v1198_v10 }
 0x49b   :  { %v1651_v32 = vpop.f32.mrf.mxu1 }
 0x49c   :  { %v1465_v57 = vadd.f32 %v1651_v32, %v1114_v37 }
 0x49d   :  { %v1459_v11 = vpop.f32.mrf.mxu1 }
 0x49e   :  { %v1469_v12 = vadd.f32 %v1702_v61, %v1465_v57  ;;  %v1460_v15 = vadd.f32 %v1459_v11, %v1109_v24 }
 0x4a0   :  { %1473 = vst [vmem:[#allocation2 + $0x18] sm:$0xff] %v1469_v12  ;;  %v1468_v6 = vadd.f32 %v1703_v3, %v1460_v15 }
 0x4a2   :  { %1472 = vst [vmem:[#allocation2 + $0x10] sm:$0xff] %v1468_v6 }
 0x4a3   :  { %1715 = shalt.err (!%p1712_p4)
}
 0x4a4   :  { %s1734_s4 = smov 128   ;;  %s1735_s10 = smov 8  }
 0x4a5   :  { %1485 = dma.vmem_to_hbm [thread:$0]  %s1480_s26, 512, %s2117_s9, [#allocation3], %s1734_s4, %s1734_s4, %s1735_s10  }
 0x4a6   :  { %1724 = dma.done.wait [#allocation3], 512  }
 0x4a7   :  { %1725 = vsyncadd [#allocation3], 4294966784 }
 0x4a8   :  { %1489 = vsyncpa [#allocation3], 1 }

</bundles_post_ra>
